<compile_context>
chip_gen: v6e
topology: v6e:2x2x1
jax: 0.10.0
libtpu: 0.0.40
codegen_flags: <defaults>
</compile_context>

<pallas_src>
import jax
import jax.numpy as jnp
from jax.experimental import pallas as pl
from jax.experimental.pallas import tpu as pltpu

D_MODEL = 128          # d_model (small stand-in for BART's 768/1024)
PAD_LEN = 256          # stands in for the original 1024-token left-padded window
VOCAB = 256
PAD_TOKEN_ID = 1       # BART pad id

# deterministic stand-ins for tokenizer.convert_tokens_to_ids(...)
BODY_ID, ENDING_ID, EOPLOT_ID, EOPREV_ID = 50, 51, 52, 53
FRONT_ID, INTRO_ID, MIDDLE_ID, SOPLOT_ID = 54, 55, 56, 57
SOPREV_ID, TAIL_ID = 58, 59

USE_MEMORY = True


def _fused_embed_gru_kernel(ids_ref, g_ref, whh_ref, bhn_ref, h_ref, out_ref):
    """Fused embedding gather + PyTorch nn.GRUCell(x, h).

       Host-side packing puts the whole x-side pre-activation in one table:
         G[v, :2D] = shared[v] @ W_i{r,z}^T + b_i{r,z} + b_h{r,z}
         G[v, 2D:] = shared[v] @ W_in^T     + b_in
       so that, with gi = one_hot(ids) @ G and gh = h_bf16 @ W_hh^T:
         r  = sigmoid(gi[:, :D]   + gh[:, :D])
         z  = sigmoid(gi[:, D:2D] + gh[:, D:2D])
         n  = tanh   (gi[:, 2D:]  + r * (gh[:, 2D:] + b_hn))
         h' = (1 - z) * n + z * h

       ids_ref : (tm, 1)   int32  padded prev-prediction ids (MUST be in [0, V))
       g_ref   : (V, 3D)   bf16   fused embed + W_ih^T + bias table (resident)
       whh_ref : (D, 3D)   bf16   W_hh^T, columns ordered [r | z | n] (resident)
       bhn_ref : (1, D)    f32    b_hn
       h_ref   : (tm, D)   f32    memory rows
    """
    tm = ids_ref.shape[0]
    vocab = g_ref.shape[0]
    d = h_ref.shape[1]

    # one_hot(ids): exact row selection on the MXU (bf16 mask, bf16 table,
    # f32 accumulation -> exact gather of the bf16 G rows).
    ids = ids_ref[...]                                                     # (tm, 1) i32
    hot = (ids == jax.lax.broadcasted_iota(jnp.int32, (tm, vocab), 1)
           ).astype(jnp.bfloat16)                                          # (tm, V) bf16

    h = h_ref[...]                                                         # (tm, D) f32
    hb = h.astype(jnp.bfloat16)

    # MXU op 1: fused gather + full x-side pre-activation (+ all r/z biases)
    gi = jnp.dot(hot, g_ref[...], preferred_element_type=jnp.float32)      # (tm, 3D) f32
    # MXU op 2: h-side pre-activation
    gh = jnp.dot(hb, whh_ref[...], preferred_element_type=jnp.float32)     # (tm, 3D) f32

    r = jax.nn.sigmoid(gi[:, :d] + gh[:, :d])
    z = jax.nn.sigmoid(gi[:, d:2 * d] + gh[:, d:2 * d])
    # b_hn must stay inside the r * (.) term, matching nn.GRUCell.
    n = jnp.tanh(gi[:, 2 * d:] + r * (gh[:, 2 * d:] + bhn_ref[...]))

    out_ref[...] = ((1.0 - z) * n + z * h).astype(out_ref.dtype)


def fused_embed_gru(ids, g_table, w_hh_t, b_hn, h, *, tm=128):
    """ids: (N, 1) int32.  g_table: (V, 3D) bf16.  w_hh_t: (D, 3D) bf16.
       b_hn: (1, D) f32.  h: (N, D) f32.  Returns (N, D) f32 new memory."""
    N = ids.shape[0]
    V, D3 = g_table.shape
    D = h.shape[1]
    assert D3 == 3 * D
    # tm = 128 keeps the gating epilogue near the 64-vreg file (tm=256 spills);
    # the row axis is "parallel" so v7x megacore can shard the two blocks.
    tm = min(tm, N)
    assert N % tm == 0 and tm % 8 == 0 and D % 128 == 0

    flops = 2 * N * (V + D) * 3 * D            # the two MXU matmuls
    transcendentals = 3 * N * D                # 2x sigmoid + 1x tanh
    bytes_accessed = (ids.size * 4 + g_table.size * 2 + w_hh_t.size * 2
                      + b_hn.size * 4 + h.size * 4 + N * D * 4)

    return pl.pallas_call(
        _fused_embed_gru_kernel,
        out_shape=jax.ShapeDtypeStruct((N, D), jnp.float32),
        grid_spec=pltpu.PrefetchScalarGridSpec(
            num_scalar_prefetch=0,
            grid=(N // tm,),
            in_specs=[
                pl.BlockSpec((tm, 1), lambda i: (i, 0)),        # token ids
                pl.BlockSpec((V, 3 * D), lambda i: (0, 0)),     # fused embed+W_ih table (resident)
                pl.BlockSpec((D, 3 * D), lambda i: (0, 0)),     # W_hh^T (resident)
                pl.BlockSpec((1, D), lambda i: (0, 0)),         # b_hn
                pl.BlockSpec((tm, D), lambda i: (i, 0)),        # memory rows
            ],
            out_specs=pl.BlockSpec((tm, D), lambda i: (i, 0)),
        ),
        compiler_params=pltpu.CompilerParams(
            dimension_semantics=("parallel",)),
        cost_estimate=pl.CostEstimate(
            flops=flops,
            transcendentals=transcendentals,
            bytes_accessed=bytes_accessed),
    )(ids, g_table, w_hh_t, b_hn, h)


class Network:
    """JAX port of the PyTorch Network (forward path only)."""

    def __init__(self, vocab_size, d_model, key):
        ks = jax.random.split(key, 5)
        scale = 1.0 / jnp.sqrt(d_model)
        # self.shared = bart.get_input_embeddings()  -> synthetic embedding table
        self.shared = 0.02 * jax.random.normal(ks[0], (vocab_size, d_model), jnp.float32)
        # nn.GRUCell(d_model, d_model) parameters, stored transposed for x @ W.
        self.w_ih_t = jax.random.uniform(ks[1], (d_model, 3 * d_model), jnp.float32, -scale, scale)
        self.w_hh_t = jax.random.uniform(ks[2], (d_model, 3 * d_model), jnp.float32, -scale, scale)
        self.b_ih = jax.random.uniform(ks[3], (1, 3 * d_model), jnp.float32, -scale, scale)
        self.b_hh = jax.random.uniform(ks[4], (1, 3 * d_model), jnp.float32, -scale, scale)
        self.d_model = d_model

        # ---- kernel-side packed parameters --------------------------------
        # Fused x-side table G = shared @ W_ih^T + b_ih, with b_hh folded into
        # the r/z columns so those gates need no in-kernel bias add.
        # TODO(synk): for a real 50k-vocab BART this V x 3D table (and the
        # VMEM-resident one-hot gather) does not fit VMEM, especially on v7x
        # (64 MiB); switch to a scalar-prefetch / DMA row-gather of the plain
        # embedding table and keep W_ih as a separate (D, 3D) matmul operand.
        d = d_model
        g_rz = (self.shared @ self.w_ih_t[:, :2 * d]
                + self.b_ih[:, :2 * d] + self.b_hh[:, :2 * d])
        g_n = self.shared @ self.w_ih_t[:, 2 * d:] + self.b_ih[:, 2 * d:]
        self.g_table = jnp.concatenate([g_rz, g_n], axis=1).astype(jnp.bfloat16)  # (V, 3D)
        self.w_hh_bf16 = self.w_hh_t.astype(jnp.bfloat16)                         # (D, 3D)
        self.b_hn = self.b_hh[:, 2 * d:]                                           # (1, D) f32

    def forward(self, memory, input_ids, attention_mask, decoder_input_ids,
                decoder_attention_mask, labels, output_hidden_states,
                prev_predictions, order, whole, intro, tail):
        for_concat_prev = prev_predictions
        # left-pad prev_predictions to the fixed window (embedding happens in-kernel)
        assert prev_predictions.shape[1] <= PAD_LEN, \
            "prev_predictions longer than the fixed pad window"
        pad = jnp.full((1, PAD_LEN - prev_predictions.shape[1]), PAD_TOKEN_ID, jnp.int32)
        prev_padded = jnp.concatenate([pad, prev_predictions], axis=1)           # (1, PAD_LEN)

        if USE_MEMORY:
            # memory = grucell(squeeze(shared(prev_padded)), squeeze(memory)).unsqueeze(0)
            new_mem = fused_embed_gru(
                prev_padded.reshape(PAD_LEN, 1).astype(jnp.int32),
                self.g_table, self.w_hh_bf16, self.b_hn,
                jnp.squeeze(memory, axis=0))
            memory = new_mem[None, ...]                                          # (1, PAD_LEN, D)

        # token-selection control flow (Python scalars, same as the original)
        if intro:
            decoding_token = INTRO_ID
        elif tail:
            decoding_token = TAIL_ID
        else:
            decoding_token = BODY_ID
        if order / whole < 0.33:
            order_token = FRONT_ID
        elif order / whole < 0.66:
            order_token = MIDDLE_ID
        else:
            order_token = ENDING_ID

        def tok(i):
            return jnp.array([[i]], dtype=jnp.int32)

        if input_ids.shape[1] + for_concat_prev.shape[1] + 5 > 1020:
            print('no previous decoder output used because of too long summary.')
        input_ids = jnp.concatenate(
            [tok(SOPLOT_ID), input_ids, tok(EOPLOT_ID), tok(SOPREV_ID),
             for_concat_prev, tok(EOPREV_ID), tok(decoding_token), tok(order_token)],
            axis=1)                                                              # (1, L')

        inputs_embeds = jnp.take(self.shared, input_ids[0], axis=0)[None, ...]   # (1, L', D)
        attention_mask = (input_ids != PAD_TOKEN_ID).astype(jnp.int32)           # (1, L')

        # TODO(synk): self.bart(...) — the full pretrained BART seq2seq forward —
        # has no clean Pallas equivalent here; return its prepared inputs instead.
        outputs = (inputs_embeds, attention_mask)
        return outputs, memory


# ---------------------------------------------------------------------------
# references for the correctness check
# ---------------------------------------------------------------------------
def _gru_reference_mirror(net, prev_ids, h):
    """Mirrors the kernel's packed bf16 operands, f32 math (tight check)."""
    d = net.d_model
    gi = jnp.take(net.g_table, prev_ids, axis=0).astype(jnp.float32)       # (N, 3D)
    gh = (h.astype(jnp.bfloat16).astype(jnp.float32)
          @ net.w_hh_bf16.astype(jnp.float32))                             # (N, 3D)
    r = jax.nn.sigmoid(gi[:, :d] + gh[:, :d])
    z = jax.nn.sigmoid(gi[:, d:2 * d] + gh[:, d:2 * d])
    n = jnp.tanh(gi[:, 2 * d:] + r * (gh[:, 2 * d:] + net.b_hn))
    return (1.0 - z) * n + z * h


def _gru_reference_f32(net, prev_ids, h):
    """Pure-f32 PyTorch-fidelity nn.GRUCell reference (loose check vs bf16 kernel)."""
    d = net.d_model
    x = jnp.take(net.shared, prev_ids, axis=0)
    gi = x @ net.w_ih_t + net.b_ih
    gh = h @ net.w_hh_t + net.b_hh
    r = jax.nn.sigmoid(gi[:, :d] + gh[:, :d])
    z = jax.nn.sigmoid(gi[:, d:2 * d] + gh[:, d:2 * d])
    n = jnp.tanh(gi[:, 2 * d:] + r * gh[:, 2 * d:])
    return (1.0 - z) * n + z * h


if __name__ == "__main__":
    key = jax.random.PRNGKey(0)
    k_net, k_mem, k_prev, k_ids = jax.random.split(key, 4)

    net = Network(VOCAB, D_MODEL, k_net)

    memory = jax.random.normal(k_mem, (1, PAD_LEN, D_MODEL), jnp.float32)
    prev_predictions = jax.random.randint(k_prev, (1, 8), 2, VOCAB, jnp.int32)
    input_ids = jax.random.randint(k_ids, (1, 16), 2, VOCAB, jnp.int32)

    (inputs_embeds, attention_mask), new_memory = net.forward(
        memory=memory,
        input_ids=input_ids,
        attention_mask=None,
        decoder_input_ids=None,
        decoder_attention_mask=None,
        labels=None,
        output_hidden_states=True,
        prev_predictions=prev_predictions,
        order=1, whole=4, intro=True, tail=False)

    jax.block_until_ready((inputs_embeds, attention_mask, new_memory))

    # ---- correctness checks of the fused Pallas kernel ----
    pad = jnp.full((1, PAD_LEN - prev_predictions.shape[1]), PAD_TOKEN_ID, jnp.int32)
    prev_ids = jnp.concatenate([pad, prev_predictions], axis=1)[0]
    h0 = memory[0]

    mirror_ref = _gru_reference_mirror(net, prev_ids, h0)   # same packed bf16 operands
    f32_ref = _gru_reference_f32(net, prev_ids, h0)         # PyTorch-fidelity f32

    assert new_memory.shape == (1, PAD_LEN, D_MODEL)
    assert jnp.allclose(new_memory[0], mirror_ref, atol=2e-3, rtol=2e-3), \
        float(jnp.max(jnp.abs(new_memory[0] - mirror_ref)))
    assert jnp.allclose(new_memory[0], f32_ref, atol=5e-2, rtol=5e-2), \
        float(jnp.max(jnp.abs(new_memory[0] - f32_ref)))

    # concatenated ids: <plot> + input_ids + </plot> + <prev> + prev + </prev> + <i/t/b> + <f/m/e>
    concat_len = input_ids.shape[1] + prev_predictions.shape[1] + 6
    assert inputs_embeds.shape == (1, concat_len, D_MODEL)
    assert attention_mask.shape == (1, concat_len)
    assert int(attention_mask.sum()) == concat_len   # no pad tokens in this example

    print("KERNEL_OK")
</pallas_src>

<mosaic_0001>
module attributes {stable_mosaic.version = 11 : i64} {
  func.func @_fused_embed_gru_kernel(%arg0: i32, %arg1: memref<128x1xi32, #tpu.memory_space<vmem>>, %arg2: memref<256x384xbf16, #tpu.memory_space<vmem>>, %arg3: memref<128x384xbf16, #tpu.memory_space<vmem>>, %arg4: memref<1x128xf32, #tpu.memory_space<vmem>>, %arg5: memref<128x128xf32, #tpu.memory_space<vmem>>, %arg6: memref<128x128xf32, #tpu.memory_space<vmem>>) attributes {dimension_semantics = [#tpu.dimension_semantics<parallel>], iteration_bounds = array<i64: 2>, scalar_prefetch = 0 : i64, scratch_operands = 0 : i64, tpu.core_type = #tpu.core_type<tc>, window_params = [{transform_indices = @transform_0, window_bounds = array<i64: 128, 1>}, {pipeline_mode = #tpu.pipeline_mode<synchronous>, transform_indices = @transform_1, window_bounds = array<i64: 256, 384>}, {pipeline_mode = #tpu.pipeline_mode<synchronous>, transform_indices = @transform_2, window_bounds = array<i64: 128, 384>}, {pipeline_mode = #tpu.pipeline_mode<synchronous>, transform_indices = @transform_3, window_bounds = array<i64: 1, 128>}, {transform_indices = @transform_4, window_bounds = array<i64: 128, 128>}, {transform_indices = @transform_5, window_bounds = array<i64: 128, 128>}]} {
    %c0 = arith.constant 0 : index
    %c0_0 = arith.constant 0 : index
    %0 = vector.load %arg1[%c0, %c0_0] : memref<128x1xi32, #tpu.memory_space<vmem>>, vector<128x1xi32>
    %1 = tpu.iota {dimensions = array<i32: 1>} : vector<128x256xi32>
    %2 = vector.broadcast %0 : vector<128x1xi32> to vector<128x256xi32>
    %3 = arith.cmpi eq, %2, %1 : vector<128x256xi32>
    %4 = arith.extui %3 : vector<128x256xi1> to vector<128x256xi32>
    %5 = arith.sitofp %4 : vector<128x256xi32> to vector<128x256xf32>
    %6 = arith.truncf %5 : vector<128x256xf32> to vector<128x256xbf16>
    %c0_1 = arith.constant 0 : index
    %c0_2 = arith.constant 0 : index
    %7 = vector.load %arg5[%c0_1, %c0_2] : memref<128x128xf32, #tpu.memory_space<vmem>>, vector<128x128xf32>
    %8 = arith.truncf %7 : vector<128x128xf32> to vector<128x128xbf16>
    %c0_3 = arith.constant 0 : index
    %c0_4 = arith.constant 0 : index
    %9 = vector.load %arg2[%c0_3, %c0_4] : memref<256x384xbf16, #tpu.memory_space<vmem>>, vector<256x384xbf16>
    %cst = arith.constant dense<0.000000e+00> : vector<128x384xf32>
    %10 = tpu.matmul %6, %9, %cst {dimension_numbers = #tpu.dot_dimension_numbers<[1], [0], [0], [1], [0, 0, 1, 1], [], []>} : vector<128x256xbf16>, vector<256x384xbf16>, vector<128x384xf32> -> vector<128x384xf32>
    %c0_5 = arith.constant 0 : index
    %c0_6 = arith.constant 0 : index
    %11 = vector.load %arg3[%c0_5, %c0_6] : memref<128x384xbf16, #tpu.memory_space<vmem>>, vector<128x384xbf16>
    %cst_7 = arith.constant dense<0.000000e+00> : vector<128x384xf32>
    %12 = tpu.matmul %8, %11, %cst_7 {dimension_numbers = #tpu.dot_dimension_numbers<[1], [0], [0], [1], [0, 0, 1, 1], [], []>} : vector<128x128xbf16>, vector<128x384xbf16>, vector<128x384xf32> -> vector<128x384xf32>
    %13 = vector.extract_strided_slice %10 {offsets = [0, 0], sizes = [128, 128], strides = [1, 1]} : vector<128x384xf32> to vector<128x128xf32>
    %14 = vector.extract_strided_slice %12 {offsets = [0, 0], sizes = [128, 128], strides = [1, 1]} : vector<128x384xf32> to vector<128x128xf32>
    %15 = arith.addf %13, %14 : vector<128x128xf32>
    %16 = arith.negf %15 : vector<128x128xf32>
    %17 = math.exp %16 : vector<128x128xf32>
    %cst_8 = arith.constant 1.000000e+00 : f32
    %18 = vector.broadcast %cst_8 : f32 to vector<128x128xf32>
    %19 = arith.addf %18, %17 : vector<128x128xf32>
    %20 = arith.divf %18, %19 : vector<128x128xf32>
    %21 = vector.extract_strided_slice %10 {offsets = [0, 128], sizes = [128, 128], strides = [1, 1]} : vector<128x384xf32> to vector<128x128xf32>
    %22 = vector.extract_strided_slice %12 {offsets = [0, 128], sizes = [128, 128], strides = [1, 1]} : vector<128x384xf32> to vector<128x128xf32>
    %23 = arith.addf %21, %22 : vector<128x128xf32>
    %24 = arith.negf %23 : vector<128x128xf32>
    %25 = math.exp %24 : vector<128x128xf32>
    %cst_9 = arith.constant 1.000000e+00 : f32
    %26 = vector.broadcast %cst_9 : f32 to vector<128x128xf32>
    %27 = arith.addf %26, %25 : vector<128x128xf32>
    %28 = arith.divf %26, %27 : vector<128x128xf32>
    %29 = vector.extract_strided_slice %10 {offsets = [0, 256], sizes = [128, 128], strides = [1, 1]} : vector<128x384xf32> to vector<128x128xf32>
    %30 = vector.extract_strided_slice %12 {offsets = [0, 256], sizes = [128, 128], strides = [1, 1]} : vector<128x384xf32> to vector<128x128xf32>
    %c0_10 = arith.constant 0 : index
    %c0_11 = arith.constant 0 : index
    %31 = vector.load %arg4[%c0_10, %c0_11] : memref<1x128xf32, #tpu.memory_space<vmem>>, vector<1x128xf32>
    %32 = vector.broadcast %31 : vector<1x128xf32> to vector<128x128xf32>
    %33 = arith.addf %30, %32 : vector<128x128xf32>
    %34 = arith.mulf %20, %33 : vector<128x128xf32>
    %35 = arith.addf %29, %34 : vector<128x128xf32>
    %36 = math.tanh %35 : vector<128x128xf32>
    %cst_12 = arith.constant 1.000000e+00 : f32
    %37 = vector.broadcast %cst_12 : f32 to vector<128x128xf32>
    %38 = arith.subf %37, %28 : vector<128x128xf32>
    %39 = arith.mulf %38, %36 : vector<128x128xf32>
    %40 = arith.mulf %28, %7 : vector<128x128xf32>
    %41 = arith.addf %39, %40 : vector<128x128xf32>
    %c0_13 = arith.constant 0 : index
    %c0_14 = arith.constant 0 : index
    %42 = vector.load %arg6[%c0_13, %c0_14] : memref<128x128xf32, #tpu.memory_space<vmem>>, vector<128x128xf32>
    tpu.vector_store %arg6[%c0_13, %c0_14], %41 {strides = array<i32>} : memref<128x128xf32, #tpu.memory_space<vmem>>, vector<128x128xf32>,
    return
  }
  func.func @transform_0(%arg0: i32) -> (i32, i32) {
    %c0_i32 = arith.constant 0 : i32
    %c0_i32_0 = arith.constant 0 : i32
    return %arg0, %c0_i32 : i32, i32
  }
  func.func @transform_1(%arg0: i32) -> (i32, i32) {
    %c0_i32 = arith.constant 0 : i32
    %c0_i32_0 = arith.constant 0 : i32
    %c0_i32_1 = arith.constant 0 : i32
    return %c0_i32, %c0_i32_0 : i32, i32
  }
  func.func @transform_2(%arg0: i32) -> (i32, i32) {
    %c0_i32 = arith.constant 0 : i32
    %c0_i32_0 = arith.constant 0 : i32
    %c0_i32_1 = arith.constant 0 : i32
    return %c0_i32, %c0_i32_0 : i32, i32
  }
  func.func @transform_3(%arg0: i32) -> (i32, i32) {
    %c0_i32 = arith.constant 0 : i32
    %c0_i32_0 = arith.constant 0 : i32
    %c0_i32_1 = arith.constant 0 : i32
    return %c0_i32, %c0_i32_0 : i32, i32
  }
  func.func @transform_4(%arg0: i32) -> (i32, i32) {
    %c0_i32 = arith.constant 0 : i32
    %c0_i32_0 = arith.constant 0 : i32
    return %arg0, %c0_i32 : i32, i32
  }
  func.func @transform_5(%arg0: i32) -> (i32, i32) {
    %c0_i32 = arith.constant 0 : i32
    %c0_i32_0 = arith.constant 0 : i32
    return %arg0, %c0_i32 : i32, i32
  }
}

</mosaic_0001>

<bundles_post_ra>
// kernel: tpu_custom_call.1
= control target key start
LH: loop header
LB: loop body
LE: loop exit
PB: predicated region body
PF: predicated region fallthrough
CT: control target
= control target key end

     0   :  { %10 = vsyncpa [#allocation3], 0  ;;  %s3231_s0 = inlined_call_operand.vmem [shape: s32[256,1], index: 0, kind: input, shape index: {}]   ;;  %s3232_s1 = inlined_call_operand.hbm [shape: bf16[256,384], index: 1, kind: input, shape index: {}]   ;;  %s3233_s2 = inlined_call_operand.hbm [shape: bf16[128,384], index: 2, kind: input, shape index: {}]   ;;  %s3234_s3 = inlined_call_operand.vmem [shape: f32[1,128], index: 3, kind: input, shape index: {}]   ;;  %s3235_s4 = inlined_call_operand.vmem [shape: f32[256,128], index: 4, kind: input, shape index: {}]   ;;  %s3236_s5 = inlined_call_operand.hbm [shape: f32[256,128], index: 5, kind: output, shape index: {}]  }
   0x1   :  { %11 = vsyncpa [#allocation6], 0 }
   0x2   :  { %12 = vsyncpa [#allocation4], 0 }
   0x3   :  { %14 = vsyncpa [#allocation4 + $0x1], 0  ;;  %s2687_s18 = smov 0   ;;  %s2689_s19 = smov 0  }
   0x4   :  { %s2691_s20 = smov 0   ;;  %s2693_s21 = smov 0  }
   0x5 LB: > { %s2708_s22 = sadd.s32 4294967295, %s2646_s21   ;;  %s1867_s23 = sadd.s32 4294967294, %s2646_s21   ;;  %s2646_s21 = sphi %s2693_s21, %s3270_s21   ;;  %s2642_s20 = sphi %s2691_s20, %s3269_s20   ;;  %s2638_s19 = sphi %s2689_s19, %s3268_s19   ;;  %s2634_s18 = sphi %s2687_s18, %s3267_s18  }
   0x6   : > { %s2712_s24 = sadd.s32 1, %s2646_s21   ;;  %s142_s25 = sadd.s32 1, %s2642_s20 }
   0x7   : > { %s139_s26 = ssub.s32 %s2646_s21, %s2712_s24  ;;  %p152_p0 = scmp.ne.s32.totalorder %s2642_s20, %s2638_s19 }
   0x8   : > { %p140_p1 = scmp.eq.s32.totalorder %s139_s26, 0  ;;  %p153_p2 = scmp.eq.s32.totalorder %s2708_s22, 1 }
   0x9   : > { %p158_p3 = scmp.ne.s32.totalorder %s2638_s19, %s2634_s18  ;;  %p159_p4 = scmp.eq.s32.totalorder %s1867_s23, 1 }
   0xa   : > { %s2723_s27 = scalar_select %p140_p1, %s2642_s20, %s142_s25  }
   0xb   : > { %p2725_p5 = por %p153_p2, %p152_p0  ;;  %p2729_p6 = por %p159_p4, %p158_p3 }
   0xc   : > { %p1868_p7 = scmp.ge.s32.totalorder %s2646_s21, 1  ;;  %p166_p8 = scmp.lt.s32.totalorder %s2646_s21, 3 }
   0xd   : > { %s3243_s29 = scalar_select %p2729_p6, 1, 0 }
   0xe   : > { %p3237_p9 = scmp.eq.s32.totalorder %s2708_s22, 0  ;;  %p2736_p10 = pnand %p1868_p7, %p166_p8 }
   0xf   : > { %s2648_s6 = smov [#allocation2]   ;;  %s2649_s9 = smov [#allocation5]  }
  0x10   : > { %s178_s7 = sshll.u32 %s2648_s6, 4  ;;  %p2209_p11 = pneg %p2736_p10  ;;  %s179_s7 = int_to_ptr.vmem [resolvable:$true] %s178_s7 }
  0x11   : > { %s191_s10 = sshll.u32 %s2649_s9, 4  ;;  %s2537_s11 = scalar_lea.vmem %s179_s7, 6144  ;;  %s192_s10 = int_to_ptr.vmem [resolvable:$true] %s191_s10 }
  0x12   : > { %p2744_p12 = pnand %p3237_p9, %p2209_p11  ;;  %p2538_p0 = scmp.ne.s32.totalorder %s179_s7, %s2537_s11 }
  0x13   : > { %p2545_p3 = scmp.lt.s32.totalorder %s179_s7, %s179_s7  ;;  %p2546_p4 = scmp.lt.s32.totalorder %s2537_s11, %s2537_s11 }
  0x14   : > { %p2528_p13 = pneg %p2744_p12 }
  0x15   : > { %p2547_p7 = por %p2546_p4, %p2545_p3 }
  0x16   : > { %p2540_p1 = pnand %p2538_p0, %p2528_p13 }
  0x18   : > { %p2541_p2 = pneg %p2540_p1 }
  0x1a   : > { %p2548_p8 = pnand %p2547_p7, %p2541_p2 }
  0x1c   : > { %2551 = shalt.err (!%p2548_p8)
}
  0x1d   : > { %s2650_s12 = smov 192   ;;  %s2651_s13 = smov 12  }
  0x1e   : > { %2212 = dma.hbm_to_vmem [thread:$0]  (!%p2744_p12), %s3232_s1, 6144, %s179_s7, [#allocation3], %s2650_s12, %s2650_s12, %s2651_s13  }
  0x1f   : > { %s2563_s16 = scalar_lea.vmem %s192_s10, 3072  ;;  %p2571_p9 = scmp.lt.s32.totalorder %s192_s10, %s192_s10 }
  0x20   : > { %p2564_p11 = scmp.ne.s32.totalorder %s192_s10, %s2563_s16  ;;  %p2572_p6 = scmp.lt.s32.totalorder %s2563_s16, %s2563_s16 }
  0x22   : > { %p2566_p0 = pnand %p2564_p11, %p2528_p13  ;;  %p2573_p3 = por %p2572_p6, %p2571_p9 }
  0x24   : > { %p2567_p1 = pneg %p2566_p0 }
  0x26   : > { %p2574_p2 = pnand %p2573_p3, %p2567_p1 }
  0x28   : > { %2577 = shalt.err (!%p2574_p2)
}
  0x29   : > { %2215 = dma.hbm_to_vmem [thread:$0]  (!%p2744_p12), %s3233_s2, 3072, %s192_s10, [#allocation6], %s2650_s12, %s2650_s12, %s2651_s13  }
  0x2a   : > { %228 = sbr.rel (%p2736_p10) target bundleno = 590 (0x24e), region = 40 }
  0x2f   : > { %p3246_p4 = scmp.eq.s32.totalorder %s2708_s22, 0 }
  0x31   : > { %2621 = dma.done.wait (%p3246_p4), [#allocation3], 6144   ;;  %p3247_p13 = pmov %p3246_p4 }
  0x32   : > { %p3248_p7 = pmov %p3246_p4 }
  0x33   : > { %2623 = vsyncadd (%p3247_p13), [#allocation3], 4294961152 }
  0x34   : > { %2625 = dma.done.wait (%p3248_p7), [#allocation6], 3072   ;;  %p3249_p6 = pmov %p3246_p4 }
  0x35   : > { %s1876_s25 = sshll.u32 %s2708_s22, 4  ;;  %v2652_v0 = vmov 0   ;;  %v2267_v7 = vld [vmem:[#allocation2 + $0xac] ss:$12 sps:$4 sm:$0xff]   ;;  %v2269_v8 = vld [vmem:[#allocation2 + $0xa8] ss:$12 sps:$4 sm:$0xff]  }
  0x36   : > { %2627 = vsyncadd (%p3249_p6), [#allocation6], 4294964224  ;;  %2266 = vset.pattern.permute.xlu1 %v2652_v0  ;;  %2265 = vset.pattern.permute.xlu0 %v2652_v0  ;;  %p266_p9 = scmp.lt.s32.totalorder %s1876_s25, 31  ;;  %v2270_v9 = vld [vmem:[#allocation2 + $0x94] ss:$12 sps:$4 sm:$0xff]   ;;  %s262_s13 = sand.u32 1, %s2638_s19  }
  0x37   : > { %802 = vmatprep.subr.bf16.mxu0 %v2267_v7  ;;  %v2272_v12 = vld [vmem:[#allocation2 + $0x90] ss:$12 sps:$4 sm:$0xff]   ;;  %v2275_v16 = vld [vmem:[#allocation2 + $0x78] ss:$12 sps:$4 sm:$0xff]   ;;  %v2278_v21 = vld [vmem:[#allocation2 + $0x60] ss:$12 sps:$4 sm:$0xff]  }
  0x38   : > { %s3272_s25 = smov (!%p266_p9, %s1876_s25), 31  ;;  %803 = vmatpush1.bf16.msra.mxu0 %v2269_v8  ;;  %v2273_v13 = vld [vmem:[#allocation2 + $0x7c] ss:$12 sps:$4 sm:$0xff]   ;;  %v2276_v17 = vld [vmem:[#allocation2 + $0x64] ss:$12 sps:$4 sm:$0xff]   ;;  %s3090_s14 = sshll.u32 %s262_s13, 7 }
  0x39   : > { %s1877_s26 = sshll.u32 %s3272_s25, 3  ;;  %804 = vmatprep.subr.bf16.mxu0 %v2270_v9  ;;  %v2291_v20 = vld [vmem:[#allocation2 + $0x170] ss:$12 sps:$4 sm:$0xff]   ;;  %v2279_v23 = vld [vmem:[#allocation2 + $0x4c] ss:$12 sps:$4 sm:$0xff]   ;;  %s3104_s15 = scalar_lea.vmem [#allocation7], %s3090_s14 }
  0x3a   : > { %s2787_s7 = scalar_lea.vmem %s3231_s0, %s1877_s26  ;;  %2087 = vmatprep.subr.bf16.mxu1 %v2291_v20  ;;  %v2294_v22 = vld [vmem:[#allocation2 + $0xb0] ss:$12 sps:$4 sm:$0xff]   ;;  %v2296_v26 = vld [vmem:[#allocation2 + $0x158] ss:$12 sps:$4 sm:$0xff]   ;;  %v2281_v27 = vld [vmem:[#allocation2 + $0x48] ss:$12 sps:$4 sm:$0xff]   ;;  %s2881_s10 = scalar_lea.vmem %s3235_s4, %s1877_s26 }
  0x3b   : > { %v281_v1 = vld [vmem:[%s2787_s7 + $0x10] sm:$0xff]  ;;  %v279_v2 = vld [vmem:[%s2787_s7] sm:$0xff]  ;;  %v282_v3 = vld [vmem:[%s2787_s7 + $0x18] sm:$0xff]  ;;  %2088 = vmatpush3.bf16.msra.mxu1 %v2294_v22  ;;  %s2086_s16 = sshll.u32 %s2708_s22, 11  ;;  %s1771_s17 = sshll.u32 %s3104_s15, 4  ;;  %s3186_s17 = int_to_ptr.vmem [resolvable:$true] %s1771_s17 }
  0x3c   : > { %305 = vperm.xlu1 %2266, %v281_v1   ;;  %299 = vperm.xlu0 %2265, %v279_v2   ;;  %v280_v4 = vld [vmem:[%s2787_s7 + $0x8] sm:$0xff]  ;;  %v283_v6 = vld [vmem:[%s2787_s7 + $0x20] sm:$0xff]  ;;  %v286_v10 = vld [vmem:[%s2787_s7 + $0x38] sm:$0xff]  ;;  %s3184_s26 = scalar_lea.hbm %s3236_s5, %s2086_s16  ;;  %s3191_s30 = scalar_lea.sflag [#allocation4], %s262_s13 }
  0x3d   : > { %v284_v5 = vld [vmem:[%s2787_s7 + $0x28] sm:$0xff]  ;;  %v285_v11 = vld [vmem:[%s2787_s7 + $0x30] sm:$0xff]  ;;  %v287_v15 = vld [vmem:[%s2787_s7 + $0x40] sm:$0xff]  ;;  %805 = vmatpush1.bf16.msra.mxu0 %v2272_v12  ;;  %2089 = vmatprep.subr.bf16.mxu1 %v2296_v26  ;;  %s2578_s22 = scalar_lea.vmem %s3186_s17, 2048  ;;  %s2654_s6 = smov [#allocation7]  }
  0x3e   : > { %v288_v14 = vld [vmem:[%s2787_s7 + $0x48] sm:$0xff]  ;;  %806 = vmatprep.subr.bf16.mxu0 %v2273_v13  ;;  %v290_v18 = vld [vmem:[%s2787_s7 + $0x58] sm:$0xff]  ;;  %v289_v19 = vld [vmem:[%s2787_s7 + $0x50] sm:$0xff]  ;;  %v2653_v13 = vmov 1.0|1.0   ;;  %p2579_p10 = scmp.ne.s32.totalorder %s3186_s17, %s2578_s22 }
  0x3f   : > { %v292_v24 = vld [vmem:[%s2787_s7 + $0x68] sm:$0xff]  ;;  %v291_v25 = vld [vmem:[%s2787_s7 + $0x60] sm:$0xff]  ;;  %v294_v31 = vld [vmem:[%s2787_s7 + $0x78] sm:$0xff] }
  0x40   : > { %308 = vperm.xlu1 %2266, %v282_v3   ;;  %302 = vperm.xlu0 %2265, %v280_v4   ;;  %v2282_v28 = vld [vmem:[#allocation2 + $0x34] ss:$12 sps:$4 sm:$0xff]   ;;  %v2299_v29 = vld [vmem:[#allocation2 + $0x98] ss:$12 sps:$4 sm:$0xff]   ;;  %v2284_v33 = vld [vmem:[#allocation2 + $0x30] ss:$12 sps:$4 sm:$0xff]   ;;  %v295_v4 = vlaneseq  ;;  %p2580_p12 = pnand %p2579_p10, %p2725_p5 }
  0x41   : > { %807 = vmatpush1.bf16.msra.mxu0 %v2275_v16  ;;  %v2301_v30 = vld [vmem:[#allocation2 + $0x140] ss:$12 sps:$4 sm:$0xff]   ;;  %v293_v32 = vld [vmem:[%s2787_s7 + $0x70] sm:$0xff]  ;;  %2090 = vmatpush3.bf16.msra.mxu1 %v2299_v29  ;;  %v2285_v36 = vld [vmem:[#allocation2 + $0x1c] ss:$12 sps:$4 sm:$0xff]   ;;  %s2582_s7 = sshll.u32 %s2654_s6, 4  ;;  %s2583_s7 = int_to_ptr.vmem [resolvable:$false] %s2582_s7 }
  0x42   : > { %808 = vmatprep.subr.bf16.mxu0 %v2276_v17  ;;  %v2304_v34 = vld [vmem:[#allocation2 + $0x80] ss:$12 sps:$4 sm:$0xff]   ;;  %2091 = vmatprep.subr.bf16.mxu1 %v2301_v30  ;;  %v2306_v35 = vld [vmem:[#allocation2 + $0x128] ss:$12 sps:$4 sm:$0xff]   ;;  %v2287_v38 = vld [vmem:[#allocation2 + $0x18] ss:$12 sps:$4 sm:$0xff]   ;;  %p2581_p8 = pneg %p2580_p12  ;;  %p2585_p11 = scmp.lt.s32.totalorder %s3186_s17, %s2583_s7 }
  0x43   : > { %v2309_v37 = vld [vmem:[#allocation2 + $0x68] ss:$12 sps:$4 sm:$0xff]   ;;  %v2311_v39 = vld [vmem:[#allocation2 + $0x110] ss:$12 sps:$4 sm:$0xff]   ;;  %v2316_v42 = vld [vmem:[#allocation2 + $0xf8] ss:$12 sps:$4 sm:$0xff]  }
  0x44   : > { %314 = vperm.xlu1 %2266, %v284_v5   ;;  %311 = vperm.xlu0 %2265, %v283_v6   ;;  %v2288_v40 = vld [vmem:[#allocation2 + $0x4] ss:$12 sps:$4 sm:$0xff]   ;;  %v2290_v43 = vld [vmem:[#allocation2] ss:$12 sps:$4 sm:$0xff]   ;;  %v2295_v47 = vld [vmem:[#allocation2 + $0x168] ss:$12 sps:$4 sm:$0xff]  }
  0x45   : > { %809 = vmatpush1.bf16.msra.mxu0 %v2278_v21  ;;  %2092 = vmatpush3.bf16.msra.mxu1 %v2304_v34  ;;  %v2314_v41 = vld [vmem:[#allocation2 + $0x50] ss:$12 sps:$4 sm:$0xff]   ;;  %v2292_v44 = vld [vmem:[#allocation2 + $0x16c] ss:$12 sps:$4 sm:$0xff]   ;;  %v2297_v48 = vld [vmem:[#allocation2 + $0x154] ss:$12 sps:$4 sm:$0xff]  }
  0x46   : > { %810 = vmatprep.subr.bf16.mxu0 %v2279_v23  ;;  %2093 = vmatprep.subr.bf16.mxu1 %v2306_v35  ;;  %v2319_v45 = vld [vmem:[#allocation2 + $0x38] ss:$12 sps:$4 sm:$0xff]   ;;  %v2321_v46 = vld [vmem:[#allocation2 + $0xe0] ss:$12 sps:$4 sm:$0xff]   ;;  %v2326_v50 = vld [vmem:[#allocation2 + $0xc8] ss:$12 sps:$4 sm:$0xff]  }
  0x47   : > { %v2324_v49 = vld [vmem:[#allocation2 + $0x20] ss:$12 sps:$4 sm:$0xff]   ;;  %v2300_v51 = vld [vmem:[#allocation2 + $0x150] ss:$12 sps:$4 sm:$0xff]   ;;  %v2329_v53 = vld [vmem:[#allocation2 + $0x8] ss:$12 sps:$4 sm:$0xff]  }
  0x48   : > { %320 = vperm.xlu1 %2266, %v286_v10   ;;  %317 = vperm.xlu0 %2265, %v285_v11   ;;  %v2302_v52 = vld [vmem:[#allocation2 + $0x13c] ss:$12 sps:$4 sm:$0xff]   ;;  %v2333_v54 = vld [vmem:[#allocation5 + $0xac] ss:$12 sps:$4 sm:$0xff]   ;;  %v2307_v56 = vld [vmem:[#allocation2 + $0x124] ss:$12 sps:$4 sm:$0xff]  }
  0x49   : > { %811 = vmatpush1.bf16.msra.mxu0 %v2281_v27  ;;  %2094 = vmatpush3.bf16.msra.mxu1 %v2309_v37  ;;  %v2305_v55 = vld [vmem:[#allocation2 + $0x138] ss:$12 sps:$4 sm:$0xff]   ;;  %v2310_v57 = vld [vmem:[#allocation2 + $0x120] ss:$12 sps:$4 sm:$0xff]   ;;  %v2315_v59 = vld [vmem:[#allocation2 + $0x108] ss:$12 sps:$4 sm:$0xff]  }
  0x4a   : > { %812 = vmatprep.subr.bf16.mxu0 %v2282_v28  ;;  %2095 = vmatprep.subr.bf16.mxu1 %v2311_v39  ;;  %v2312_v58 = vld [vmem:[#allocation2 + $0x10c] ss:$12 sps:$4 sm:$0xff]   ;;  %v2317_v60 = vld [vmem:[#allocation2 + $0xf4] ss:$12 sps:$4 sm:$0xff]   ;;  %v2320_v61 = vld [vmem:[#allocation2 + $0xf0] ss:$12 sps:$4 sm:$0xff]  }
  0x4b   : > { %v2322_v62 = vld [vmem:[#allocation2 + $0xdc] ss:$12 sps:$4 sm:$0xff]   ;;  %v2325_v63 = vld [vmem:[#allocation2 + $0xd8] ss:$12 sps:$4 sm:$0xff]   ;;  %v2330_v2 = vld [vmem:[#allocation2 + $0xc0] ss:$12 sps:$4 sm:$0xff]  }
  0x4c   : > { %326 = vperm.xlu1 %2266, %v288_v14   ;;  %323 = vperm.xlu0 %2265, %v287_v15   ;;  %v2327_v1 = vld [vmem:[#allocation2 + $0xc4] ss:$12 sps:$4 sm:$0xff]   ;;  %v2805_v5 = vand.u32 127, %v295_v4  ;;  %v2331_v12 = vld [vmem:[#allocation5 + $0xa8] ss:$12 sps:$4 sm:$0xff]   ;;  %s2584_s8 = scalar_lea.vmem %s2583_s7, 4096 }
  0x4d   : > { %813 = vmatpush1.bf16.msra.mxu0 %v2284_v33  ;;  %2096 = vmatpush3.bf16.msra.mxu1 %v2314_v41  ;;  %v2355_v3 = vld [vmem:[#allocation5 + $0xb0] ss:$12 sps:$4 sm:$0xff]   ;;  %v2336_v14 = vld [vmem:[#allocation5 + $0x94] ss:$12 sps:$4 sm:$0xff]   ;;  %v2356_v15 = vld [vmem:[#allocation5 + $0x98] ss:$12 sps:$4 sm:$0xff]   ;;  %p2586_p0 = scmp.lt.s32.totalorder %s2584_s8, %s2578_s22 }
  0x4e   : > { %814 = vmatprep.subr.bf16.mxu0 %v2285_v36  ;;  %2097 = vmatprep.subr.bf16.mxu1 %v2316_v42  ;;  %v2808_v8 = vadd.s32 128, %v2805_v5  ;;  %v2334_v16 = vld [vmem:[#allocation5 + $0x90] ss:$12 sps:$4 sm:$0xff]   ;;  %v2337_v20 = vld [vmem:[#allocation5 + $0x78] ss:$12 sps:$4 sm:$0xff]  }
  0x4f   : > { %v2342_v21 = vld [vmem:[#allocation5 + $0x64] ss:$12 sps:$4 sm:$0xff]   ;;  %v2357_v22 = vld [vmem:[#allocation5 + $0x80] ss:$12 sps:$4 sm:$0xff]   ;;  %v2358_v23 = vld [vmem:[#allocation5 + $0x68] ss:$12 sps:$4 sm:$0xff]   ;;  %p2587_p1 = por %p2586_p0, %p2585_p11 }
  0x50   : > { %332 = vperm.xlu1 %2266, %v290_v18   ;;  %329 = vperm.xlu0 %2265, %v289_v19   ;;  %v2339_v19 = vld [vmem:[#allocation5 + $0x7c] ss:$12 sps:$4 sm:$0xff]   ;;  %v2340_v26 = vld [vmem:[#allocation5 + $0x60] ss:$12 sps:$4 sm:$0xff]   ;;  %v2349_v35 = vld [vmem:[#allocation5 + $0x18] ss:$12 sps:$4 sm:$0xff]  }
  0x51   : > { %815 = vmatpush1.bf16.msra.mxu0 %v2287_v38  ;;  %2098 = vmatpush3.bf16.msra.mxu1 %v2319_v45  ;;  %v2345_v27 = vld [vmem:[#allocation5 + $0x4c] ss:$12 sps:$4 sm:$0xff]   ;;  %v2343_v28 = vld [vmem:[#allocation5 + $0x48] ss:$12 sps:$4 sm:$0xff]   ;;  %v2359_v30 = vld [vmem:[#allocation5 + $0x50] ss:$12 sps:$4 sm:$0xff]   ;;  %p2588_p3 = pnand %p2587_p1, %p2581_p8 }
  0x52   : > { %816 = vmatprep.subr.bf16.mxu0 %v2288_v40  ;;  %2099 = vmatprep.subr.bf16.mxu1 %v2321_v46  ;;  %v2348_v29 = vld [vmem:[#allocation5 + $0x34] ss:$12 sps:$4 sm:$0xff]   ;;  %v2346_v33 = vld [vmem:[#allocation5 + $0x30] ss:$12 sps:$4 sm:$0xff]   ;;  %v2360_v36 = vld [vmem:[#allocation5 + $0x38] ss:$12 sps:$4 sm:$0xff]  }
  0x53   : > { %v2351_v34 = vld [vmem:[#allocation5 + $0x1c] ss:$12 sps:$4 sm:$0xff]   ;;  %v2354_v37 = vld [vmem:[#allocation5 + $0x4] ss:$12 sps:$4 sm:$0xff]   ;;  %v2361_v38 = vld [vmem:[#allocation5 + $0x20] ss:$12 sps:$4 sm:$0xff]  }
  0x54   : > { %338 = vperm.xlu1 %2266, %v292_v24   ;;  %335 = vperm.xlu0 %2265, %v291_v25   ;;  %v2352_v41 = vld [vmem:[#allocation5] ss:$12 sps:$4 sm:$0xff]   ;;  %v2362_v42 = vld [vmem:[#allocation5 + $0x8] ss:$12 sps:$4 sm:$0xff]  }
  0x55   : > { %817 = vmatpush1.bf16.msra.mxu0 %v2290_v43  ;;  %2100 = vmatpush3.bf16.msra.mxu1 %v2324_v49 }
  0x56   : > { %818 = vmatprep.subr.bf16.mxu0 %v2292_v44  ;;  %2101 = vmatprep.subr.bf16.mxu1 %v2326_v50  ;;  %v2899_v50 = vld [vmem:[%s2881_s10 + $0x10] sm:$0xff] }
  0x58   : > { %344 = vperm.xlu1 %2266, %v294_v31   ;;  %341 = vperm.xlu0 %2265, %v293_v32  }
  0x59   : > { %819 = vmatpush2.bf16.msra.mxu0 %v2295_v47  ;;  %2102 = vmatpush3.bf16.msra.mxu1 %v2329_v53  ;;  %v2888_v47 = vld [vmem:[%s2881_s10] sm:$0xff]  ;;  %v2908_v53 = vld [vmem:[%s2881_s10 + $0x28] sm:$0xff] }
  0x5a   : > { %820 = vmatprep.subr.bf16.mxu0 %v2297_v48  ;;  %1172 = vmatprep.subr.bf16.mxu1 %v2333_v54  ;;  %v2891_v48 = vld [vmem:[%s2881_s10 + $0x8] sm:$0xff] }
  0x5b   : > { %v474_v49 = vpack.c.bf16 %v2891_v48, %v2888_v47 }
  0x5d   : > { %821 = vmatpush2.bf16.msra.mxu0 %v2300_v51  ;;  %v2902_v51 = vld [vmem:[%s2881_s10 + $0x18] sm:$0xff] }
  0x5e   : > { %822 = vmatprep.subr.bf16.mxu0 %v2302_v52  ;;  %v2905_v52 = vld [vmem:[%s2881_s10 + $0x20] sm:$0xff]  ;;  %v475_v54 = vpack.c.bf16 %v2902_v51, %v2899_v50 }
  0x61   : > { %823 = vmatpush2.bf16.msra.mxu0 %v2305_v55  ;;  %v476_v55 = vpack.c.bf16 %v2908_v53, %v2905_v52 }
  0x62   : > { %824 = vmatprep.subr.bf16.mxu0 %v2307_v56  ;;  %v2916_v56 = vld [vmem:[%s2881_s10 + $0x30] sm:$0xff] }
  0x65   : > { %825 = vmatpush2.bf16.msra.mxu0 %v2310_v57  ;;  %v2919_v57 = vld [vmem:[%s2881_s10 + $0x38] sm:$0xff] }
  0x66   : > { %826 = vmatprep.subr.bf16.mxu0 %v2312_v58  ;;  %v2922_v58 = vld [vmem:[%s2881_s10 + $0x40] sm:$0xff] }
  0x69   : > { %827 = vmatpush2.bf16.msra.mxu0 %v2315_v59  ;;  %v2925_v59 = vld [vmem:[%s2881_s10 + $0x48] sm:$0xff] }
  0x6a   : > { %828 = vmatprep.subr.bf16.mxu0 %v2317_v60  ;;  %3252 = vst [vmem:[#allocation11_spill] sm:$0xff] %v2925_v59  ;;  %v477_v60 = vpack.c.bf16 %v2919_v57, %v2916_v56 }
  0x6d   : > { %829 = vmatpush2.bf16.msra.mxu0 %v2320_v61  ;;  %v478_v61 = vpack.c.bf16 %v2925_v59, %v2922_v58 }
  0x6e   : > { %830 = vmatprep.subr.bf16.mxu0 %v2322_v62  ;;  %v2933_v62 = vld [vmem:[%s2881_s10 + $0x50] sm:$0xff] }
  0x6f   : > { %3253 = vst [vmem:[#allocation12_spill] sm:$0xff] %v2933_v62 }
  0x71   : > { %831 = vmatpush2.bf16.msra.mxu0 %v2325_v63  ;;  %v2936_v63 = vld [vmem:[%s2881_s10 + $0x58] sm:$0xff] }
  0x72   : > { %832 = vmatprep.subr.bf16.mxu0 %v2327_v1  ;;  %3254 = vst [vmem:[#allocation13_spill] sm:$0xff] %v2936_v63  ;;  %v2939_v1 = vld [vmem:[%s2881_s10 + $0x60] sm:$0xff] }
  0x73   : > { %3255 = vst [vmem:[#allocation14_spill] sm:$0xff] %v2939_v1 }
  0x75   : > { %833 = vmatpush2.bf16.msra.mxu0 %v2330_v2  ;;  %v471_v2 = vld [vmem:[%s2881_s10 + $0x68] sm:$0xff] }
  0x76   : > { %2167 = vmatprep.subr.bf16.mxu0 %v2355_v3  ;;  %v480_v4 = vpack.c.bf16 %v471_v2, %v2939_v1 }
  0xb7   : > { %v306_v6 = vpop.permute.xlu1 %305  ;;  %v300_v7 = vpop.permute.xlu0 %299 }
  0xb8   : > { %vm351_vm0 = vcmp.eq.s32.totalorder %v306_v6, %v2808_v8  ;;  %vm346_vm4 = vcmp.eq.s32.totalorder %v300_v7, %v2805_v5  ;;  %vm347_vm7 = vcmp.eq.s32.totalorder %v300_v7, %v2808_v8  ;;  %vm350_vm9 = vcmp.eq.s32.totalorder %v306_v6, %v2805_v5  ;;  %v473_v6 = vld [vmem:[%s2881_s10 + $0x78] sm:$0xff] }
  0xbb   : > { %v309_v9 = vpop.permute.xlu1 %308  ;;  %v303_v10 = vpop.permute.xlu0 %302 }
  0xbc   : > { %vm353_vm1 = vcmp.eq.s32.totalorder %v309_v9, %v2808_v8  ;;  %vm348_vm2 = vcmp.eq.s32.totalorder %v303_v10, %v2805_v5  ;;  %vm349_vm3 = vcmp.eq.s32.totalorder %v303_v10, %v2808_v8  ;;  %vm352_vm10 = vcmp.eq.s32.totalorder %v309_v9, %v2805_v5 }
  0xbd   : > { %vm2815_vm5 = vmpackc.low %vm353_vm1, %vm351_vm0 }
  0xbe   : > { %vm1962_vm6 = vmpackc.low %vm348_vm2, %vm346_vm4 }
  0xbf   : > { %vm1960_vm8 = vmpackc.low %vm349_vm3, %vm347_vm7  ;;  %v315_v17 = vpop.permute.xlu1 %314  ;;  %v312_v18 = vpop.permute.xlu0 %311 }
  0xc0   : > { %1961 = vmatprep.mubr.msk.bf16.mxu0 %vm1960_vm8, %v2653_v13  ;;  %1993 = vmatprep.mubr.msk.bf16.mxu1 %vm1960_vm8, %v2653_v13  ;;  %vm357_vm11 = vcmp.eq.s32.totalorder %v315_v17, %v2808_v8  ;;  %vm355_vm12 = vcmp.eq.s32.totalorder %v312_v18, %v2808_v8  ;;  %vm1966_vm13 = vmpackc.low %vm352_vm10, %vm350_vm9  ;;  %vm356_vm15 = vcmp.eq.s32.totalorder %v315_v17, %v2805_v5 }
  0xc1   : > { %1963 = vmatmul.mubr.msk.bf16.vlgmr.msra.gmra.mxu0 %vm1962_vm6, %v2653_v13  ;;  %1995 = vmatmul.mubr.msk.bf16.vlgmr.msra.gmra.mxu1 %vm1962_vm6, %v2653_v13  ;;  %vm1968_vm14 = vmpackc.low %vm357_vm11, %vm355_vm12  ;;  %vm354_vm0 = vcmp.eq.s32.totalorder %v312_v18, %v2805_v5 }
  0xc2   : > { %1173 = vmatpush1.bf16.msra.mxu1 %v2331_v12  ;;  %1965 = vmatprep.mubr.msk.bf16.mxu0 %vm2815_vm5, %v2653_v13  ;;  %vm1970_vm3 = vmpackc.low %vm356_vm15, %vm354_vm0 }
  0xc3   : > { %1997 = vmatprep.mubr.msk.bf16.mxu1 %vm2815_vm5, %v2653_v13  ;;  %1174 = vmatprep.subr.bf16.mxu1 %v2336_v14  ;;  %v321_v24 = vpop.permute.xlu1 %320  ;;  %v318_v25 = vpop.permute.xlu0 %317 }
  0xc4   : > { %2168 = vmatpush3.bf16.msra.mxu0 %v2355_v3  ;;  %vm361_vm1 = vcmp.eq.s32.totalorder %v321_v24, %v2808_v8  ;;  %vm359_vm2 = vcmp.eq.s32.totalorder %v318_v25, %v2808_v8  ;;  %vm360_vm5 = vcmp.eq.s32.totalorder %v321_v24, %v2805_v5  ;;  %vm358_vm6 = vcmp.eq.s32.totalorder %v318_v25, %v2805_v5 }
  0xc5   : > { %2169 = vmatprep.subr.bf16.mxu0 %v2356_v15  ;;  %vm1972_vm4 = vmpackc.low %vm361_vm1, %vm359_vm2  ;;  %v479_v3 = vpack.c.bf16 %v2936_v63, %v2933_v62 }
  0xc6   : > { %1175 = vmatpush1.bf16.msra.mxu1 %v2334_v16  ;;  %vm1974_vm9 = vmpackc.low %vm360_vm5, %vm358_vm6 }
  0xc7   : > { %1176 = vmatprep.subr.bf16.mxu1 %v2339_v19  ;;  %v327_v31 = vpop.permute.xlu1 %326  ;;  %v324_v32 = vpop.permute.xlu0 %323 }
  0xc8   : > { %2170 = vmatpush3.bf16.msra.mxu0 %v2356_v15  ;;  %vm365_vm7 = vcmp.eq.s32.totalorder %v327_v31, %v2808_v8  ;;  %vm363_vm8 = vcmp.eq.s32.totalorder %v324_v32, %v2808_v8  ;;  %vm364_vm11 = vcmp.eq.s32.totalorder %v327_v31, %v2805_v5  ;;  %vm362_vm12 = vcmp.eq.s32.totalorder %v324_v32, %v2805_v5 }
  0xc9   : > { %1967 = vmatmul.mubr.msk.bf16.gmra.mxu0 %vm1966_vm13, %v2653_v13  ;;  %1999 = vmatmul.mubr.msk.bf16.gmra.mxu1 %vm1966_vm13, %v2653_v13  ;;  %vm1976_vm10 = vmpackc.low %vm365_vm7, %vm363_vm8 }
  0xca   : > { %1969 = vmatprep.mubr.msk.bf16.mxu0 %vm1968_vm14, %v2653_v13  ;;  %2001 = vmatprep.mubr.msk.bf16.mxu1 %vm1968_vm14, %v2653_v13  ;;  %vm1978_vm15 = vmpackc.low %vm364_vm11, %vm362_vm12 }
  0xcb   : > { %1177 = vmatpush1.bf16.msra.mxu1 %v2337_v20  ;;  %2171 = vmatprep.subr.bf16.mxu0 %v2357_v22  ;;  %v333_v39 = vpop.permute.xlu1 %332  ;;  %v330_v40 = vpop.permute.xlu0 %329 }
  0xcc   : > { %1178 = vmatprep.subr.bf16.mxu1 %v2342_v21  ;;  %2172 = vmatpush3.bf16.msra.mxu0 %v2357_v22  ;;  %vm369_vm13 = vcmp.eq.s32.totalorder %v333_v39, %v2808_v8  ;;  %vm367_vm14 = vcmp.eq.s32.totalorder %v330_v40, %v2808_v8  ;;  %vm368_vm1 = vcmp.eq.s32.totalorder %v333_v39, %v2805_v5 }
  0xcd   : > { %2173 = vmatprep.subr.bf16.mxu0 %v2358_v23  ;;  %vm1980_vm0 = vmpackc.low %vm369_vm13, %vm367_vm14  ;;  %vm366_vm2 = vcmp.eq.s32.totalorder %v330_v40, %v2805_v5 }
  0xce   : > { %vm1982_vm5 = vmpackc.low %vm368_vm1, %vm366_vm2 }
  0xcf   : > { %1179 = vmatpush1.bf16.msra.mxu1 %v2340_v26  ;;  %v339_v43 = vpop.permute.xlu1 %338  ;;  %v336_v44 = vpop.permute.xlu0 %335 }
  0xd0   : > { %1180 = vmatprep.subr.bf16.mxu1 %v2345_v27  ;;  %2174 = vmatpush3.bf16.msra.mxu0 %v2358_v23  ;;  %vm372_vm7 = vcmp.eq.s32.totalorder %v339_v43, %v2805_v5  ;;  %vm370_vm8 = vcmp.eq.s32.totalorder %v336_v44, %v2805_v5 }
  0xd1   : > { %1971 = vmatmul.mubr.msk.bf16.gmra.mxu0 %vm1970_vm3, %v2653_v13  ;;  %2003 = vmatmul.mubr.msk.bf16.gmra.mxu1 %vm1970_vm3, %v2653_v13  ;;  %vm373_vm3 = vcmp.eq.s32.totalorder %v339_v43, %v2808_v8  ;;  %vm1986_vm11 = vmpackc.low %vm372_vm7, %vm370_vm8 }
  0xd2   : > { %1973 = vmatprep.mubr.msk.bf16.mxu0 %vm1972_vm4, %v2653_v13  ;;  %2005 = vmatprep.mubr.msk.bf16.mxu1 %vm1972_vm4, %v2653_v13  ;;  %vm371_vm4 = vcmp.eq.s32.totalorder %v336_v44, %v2808_v8 }
  0xd3   : > { %1181 = vmatpush1.bf16.msra.mxu1 %v2343_v28  ;;  %2175 = vmatprep.subr.bf16.mxu0 %v2359_v30  ;;  %vm1984_vm6 = vmpackc.low %vm373_vm3, %vm371_vm4  ;;  %v345_v45 = vpop.permute.xlu1 %344  ;;  %v342_v46 = vpop.permute.xlu0 %341 }
  0xd4   : > { %1182 = vmatprep.subr.bf16.mxu1 %v2348_v29  ;;  %2176 = vmatpush3.bf16.msra.mxu0 %v2359_v30  ;;  %vm376_vm13 = vcmp.eq.s32.totalorder %v345_v45, %v2805_v5  ;;  %vm374_vm14 = vcmp.eq.s32.totalorder %v342_v46, %v2805_v5  ;;  %v472_v5 = vld [vmem:[%s2881_s10 + $0x70] sm:$0xff] }
  0xd5   : > { %2177 = vmatprep.subr.bf16.mxu0 %v2360_v36  ;;  %v481_v7 = vpack.c.bf16 %v473_v6, %v472_v5 }
  0xd7   : > { %1183 = vmatpush1.bf16.msra.mxu1 %v2346_v33 }
  0xd8   : > { %1184 = vmatprep.subr.bf16.mxu1 %v2351_v34  ;;  %2178 = vmatpush3.bf16.msra.mxu0 %v2360_v36 }
  0xd9   : > { %1975 = vmatmul.mubr.msk.bf16.gmra.mxu0 %vm1974_vm9, %v2653_v13  ;;  %2007 = vmatmul.mubr.msk.bf16.gmra.mxu1 %vm1974_vm9, %v2653_v13  ;;  %vm377_vm9 = vcmp.eq.s32.totalorder %v345_v45, %v2808_v8 }
  0xda   : > { %1977 = vmatprep.mubr.msk.bf16.mxu0 %vm1976_vm10, %v2653_v13  ;;  %2009 = vmatprep.mubr.msk.bf16.mxu1 %vm1976_vm10, %v2653_v13  ;;  %vm375_vm10 = vcmp.eq.s32.totalorder %v342_v46, %v2808_v8 }
  0xdb   : > { %1185 = vmatpush1.bf16.msra.mxu1 %v2349_v35  ;;  %2179 = vmatprep.subr.bf16.mxu0 %v2361_v38  ;;  %vm1988_vm12 = vmpackc.low %vm377_vm9, %vm375_vm10 }
  0xdc   : > { %1186 = vmatprep.subr.bf16.mxu1 %v2354_v37  ;;  %2180 = vmatpush3.bf16.msra.mxu0 %v2361_v38 }
  0xdd   : > { %2181 = vmatprep.subr.bf16.mxu0 %v2362_v42 }
  0xdf   : > { %1187 = vmatpush1.bf16.msra.mxu1 %v2352_v41 }
  0xe0   : > { %2182 = vmatpush3.bf16.msra.mxu0 %v2362_v42 }
  0xe1   : > { %1979 = vmatmul.mubr.msk.bf16.gmra.mxu0 %vm1978_vm15, %v2653_v13  ;;  %2011 = vmatmul.mubr.msk.bf16.gmra.mxu1 %vm1978_vm15, %v2653_v13  ;;  %vm1990_vm15 = vmpackc.low %vm376_vm13, %vm374_vm14 }
  0xe2   : > { %1981 = vmatprep.mubr.msk.bf16.mxu0 %vm1980_vm0, %v2653_v13  ;;  %2013 = vmatprep.mubr.msk.bf16.mxu1 %vm1980_vm0, %v2653_v13 }
  0xe9   : > { %1983 = vmatmul.mubr.msk.bf16.gmra.mxu0 %vm1982_vm5, %v2653_v13  ;;  %2015 = vmatmul.mubr.msk.bf16.gmra.mxu1 %vm1982_vm5, %v2653_v13 }
  0xea   : > { %1985 = vmatprep.mubr.msk.bf16.mxu0 %vm1984_vm6, %v2653_v13  ;;  %2017 = vmatprep.mubr.msk.bf16.mxu1 %vm1984_vm6, %v2653_v13 }
  0xf1   : > { %1987 = vmatmul.mubr.msk.bf16.gmra.mxu0 %vm1986_vm11, %v2653_v13  ;;  %2019 = vmatmul.mubr.msk.bf16.gmra.mxu1 %vm1986_vm11, %v2653_v13 }
  0xf2   : > { %1989 = vmatprep.mubr.msk.bf16.mxu0 %vm1988_vm12, %v2653_v13  ;;  %2021 = vmatprep.mubr.msk.bf16.mxu1 %vm1988_vm12, %v2653_v13 }
  0xf9   : > { %1991 = vmatmul.mubr.msk.bf16.gmra.mxu0 %vm1990_vm15, %v2653_v13  ;;  %2023 = vmatmul.mubr.msk.bf16.gmra.mxu1 %vm1990_vm15, %v2653_v13 }
  0xfa   : > { %1204 = vmatprep.mubr.bf16.mxu1 %v2652_v0  ;;  %2183 = vmatprep.mubr.bf16.mxu0 %v474_v49 }
 0x101   : > { %1205 = vmatmul.mubr.bf16.vlgmr.msra.gmra.mxu1 %v474_v49  ;;  %2184 = vmatmul.mubr.bf16.vlgmr.msra.gmra.mxu0 %v475_v54 }
 0x102   : > { %1214 = vmatprep.mubr.bf16.mxu1 %v2652_v0  ;;  %2187 = vmatprep.mubr.bf16.mxu0 %v476_v55 }
 0x109   : > { %1215 = vmatmul.mubr.bf16.gmra.mxu1 %v475_v54  ;;  %2188 = vmatmul.mubr.bf16.gmra.mxu0 %v477_v60 }
 0x10a   : > { %1224 = vmatprep.mubr.bf16.mxu1 %v2652_v0  ;;  %2191 = vmatprep.mubr.bf16.mxu0 %v478_v61 }
 0x111   : > { %1225 = vmatmul.mubr.bf16.gmra.mxu1 %v476_v55  ;;  %2192 = vmatmul.mubr.bf16.gmra.mxu0 %v479_v3 }
 0x112   : > { %1234 = vmatprep.mubr.bf16.mxu1 %v2652_v0  ;;  %2195 = vmatprep.mubr.bf16.mxu0 %v480_v4 }
 0x119   : > { %1235 = vmatmul.mubr.bf16.gmra.mxu1 %v477_v60  ;;  %2196 = vmatmul.mubr.bf16.gmra.mxu0 %v481_v7 }
 0x11a   : > { %1244 = vmatprep.mubr.bf16.mxu1 %v2652_v0 }
 0x121   : > { %1245 = vmatmul.mubr.bf16.gmra.mxu1 %v478_v61 }
 0x122   : > { %1254 = vmatprep.mubr.bf16.mxu1 %v2652_v0 }
 0x129   : > { %1255 = vmatmul.mubr.bf16.gmra.mxu1 %v479_v3 }
 0x12a   : > { %1264 = vmatprep.mubr.bf16.mxu1 %v2652_v0 }
 0x131   : > { %1265 = vmatmul.mubr.bf16.gmra.mxu1 %v480_v4 }
 0x132   : > { %1274 = vmatprep.mubr.bf16.mxu1 %v2652_v0 }
 0x139   : > { %1275 = vmatmul.mubr.bf16.gmra.mxu1 %v481_v7 }
 0x181   : > { %v2952_v8 = vpop.f32.mrf.mxu0  ;;  %v2103_v9 = vpop.f32.mrf.mxu1 }
 0x183   : > { %v2954_v10 = vpop.f32.mrf.mxu0  ;;  %v2104_v11 = vpop.f32.mrf.mxu1 }
 0x184   : > { %v2956_v12 = vadd.f32 %v2104_v11, %v2103_v9 }
 0x185   : > { %v2958_v13 = vpop.f32.mrf.mxu0  ;;  %v2106_v14 = vpop.f32.mrf.mxu1 }
 0x187   : > { %v2960_v15 = vpop.f32.mrf.mxu0  ;;  %v2107_v16 = vpop.f32.mrf.mxu1 }
 0x188   : > { %v2962_v17 = vadd.f32 %v2107_v16, %v2106_v14 }
 0x189   : > { %v2964_v18 = vpop.f32.mrf.mxu0  ;;  %v2109_v0 = vpop.f32.mrf.mxu1 }
 0x18b   : > { %v2966_v19 = vpop.f32.mrf.mxu0  ;;  %v2110_v20 = vpop.f32.mrf.mxu1 }
 0x18c   : > { %v2968_v21 = vadd.f32 %v2110_v20, %v2109_v0 }
 0x18d   : > { %v2970_v22 = vpop.f32.mrf.mxu0  ;;  %v2112_v23 = vpop.f32.mrf.mxu1 }
 0x18f   : > { %v2972_v24 = vpop.f32.mrf.mxu0  ;;  %v2113_v25 = vpop.f32.mrf.mxu1 }
 0x190   : > { %v2974_v26 = vadd.f32 %v2113_v25, %v2112_v23 }
 0x191   : > { %v2976_v27 = vpop.f32.mrf.mxu0  ;;  %v2115_v28 = vpop.f32.mrf.mxu1 }
 0x193   : > { %v2978_v29 = vpop.f32.mrf.mxu0  ;;  %v2116_v30 = vpop.f32.mrf.mxu1 }
 0x194   : > { %v2980_v31 = vadd.f32 %v2116_v30, %v2115_v28 }
 0x195   : > { %v2982_v32 = vpop.f32.mrf.mxu0  ;;  %v2118_v33 = vpop.f32.mrf.mxu1 }
 0x197   : > { %v2984_v34 = vpop.f32.mrf.mxu0  ;;  %v2119_v35 = vpop.f32.mrf.mxu1 }
 0x198   : > { %v2986_v36 = vadd.f32 %v2119_v35, %v2118_v33 }
 0x199   : > { %v2988_v37 = vpop.f32.mrf.mxu0  ;;  %v2121_v38 = vpop.f32.mrf.mxu1 }
 0x19b   : > { %v2990_v39 = vpop.f32.mrf.mxu0  ;;  %v2122_v40 = vpop.f32.mrf.mxu1 }
 0x19c   : > { %v2992_v41 = vadd.f32 %v2122_v40, %v2121_v38 }
 0x19d   : > { %v2994_v42 = vpop.f32.mrf.mxu0  ;;  %v2124_v43 = vpop.f32.mrf.mxu1 }
 0x19f   : > { %v2996_v44 = vpop.f32.mrf.mxu0  ;;  %v2125_v45 = vpop.f32.mrf.mxu1 }
 0x1a0   : > { %v2998_v46 = vadd.f32 %v2125_v45, %v2124_v43 }
 0x1a1   : > { %v3000_v49 = vpop.f32.mrf.mxu0  ;;  %v2127_v54 = vpop.f32.mrf.mxu1 }
 0x1a3   : > { %v3002_v55 = vpop.f32.mrf.mxu0  ;;  %v2128_v60 = vpop.f32.mrf.mxu1 }
 0x1a4   : > { %v3004_v61 = vadd.f32 %v2128_v60, %v2127_v54 }
 0x1a5   : > { %v3006_v2 = vpop.f32.mrf.mxu0  ;;  %v2130_v3 = vpop.f32.mrf.mxu1 }
 0x1a7   : > { %v3008_v4 = vpop.f32.mrf.mxu0  ;;  %v2131_v5 = vpop.f32.mrf.mxu1 }
 0x1a8   : > { %v3010_v6 = vadd.f32 %v2131_v5, %v2130_v3 }
 0x1a9   : > { %v3012_v7 = vpop.f32.mrf.mxu0  ;;  %v2133_v9 = vpop.f32.mrf.mxu1 }
 0x1ab   : > { %v3014_v11 = vpop.f32.mrf.mxu0  ;;  %v2134_v14 = vpop.f32.mrf.mxu1 }
 0x1ac   : > { %v3016_v16 = vadd.f32 %v2134_v14, %v2133_v9 }
 0x1ad   : > { %v2136_v0 = vpop.f32.mrf.mxu1  ;;  %v3018_v20 = vpop.f32.mrf.mxu0 }
 0x1af   : > { %v2137_v23 = vpop.f32.mrf.mxu1  ;;  %v3022_v30 = vpop.f32.mrf.mxu0 }
 0x1b0   : > { %v3020_v25 = vadd.f32 %v2137_v23, %v2136_v0 }
 0x1b1   : > { %v2139_v28 = vpop.f32.mrf.mxu1  ;;  %v3026_v40 = vpop.f32.mrf.mxu0 }
 0x1b3   : > { %v2140_v33 = vpop.f32.mrf.mxu1  ;;  %v3030_v60 = vpop.f32.mrf.mxu0 }
 0x1b4   : > { %v3024_v35 = vadd.f32 %v2140_v33, %v2139_v28 }
 0x1b5   : > { %v2142_v38 = vpop.f32.mrf.mxu1  ;;  %v3034_v14 = vpop.f32.mrf.mxu0 }
 0x1b7   : > { %v2143_v43 = vpop.f32.mrf.mxu1  ;;  %v3039_v1 = vpop.f32.mrf.mxu0 }
 0x1b8   : > { %v3028_v45 = vadd.f32 %v2143_v43, %v2142_v38 }
 0x1b9   : > { %v2145_v54 = vpop.f32.mrf.mxu1 }
 0x1ba   : > { %3256 = vst [vmem:[#allocation15_spill] sm:$0xff] %v3028_v45  ;;  %v3042_v45 = vpop.f32.mrf.mxu0 }
 0x1bb   : > { %v2146_v3 = vpop.f32.mrf.mxu1 }
 0x1bc   : > { %v3032_v5 = vadd.f32 %v2146_v3, %v2145_v54 }
 0x1bd   : > { %v2148_v9 = vpop.f32.mrf.mxu1 }
 0x1be   : > { %3257 = vst [vmem:[#allocation16_spill] sm:$0xff] %v3032_v5 }
 0x1bf   : > { %v2149_v0 = vpop.f32.mrf.mxu1 }
 0x1c0   : > { %v3036_v23 = vadd.f32 %v2149_v0, %v2148_v9  ;;  %v3046_v0 = vpop.f32.mrf.mxu0 }
 0x1c1   : > { %v1206_v28 = vpop.f32.mrf.mxu1 }
 0x1c2   : > { %3258 = vst [vmem:[#allocation17_spill] sm:$0xff] %v3036_v23  ;;  %v1382_v33 = vadd.f32 %v1206_v28, %v2952_v8 }
 0x1c3   : > { %v1208_v63 = vpop.f32.mrf.mxu1 }
 0x1c4   : > { %v2048_v38 = vmul.f32 -1.442695, %v1382_v33  ;;  %v1494_v54 = vadd.f32 %v1208_v63, %v2954_v10  ;;  %v3051_v63 = vpop.f32.mrf.mxu0 }
 0x1c5   : > { %v1210_v43 = vpop.f32.mrf.mxu1 }
 0x1c6   : > { %2363 = vpow2.f32 %v2048_v38  ;;  %v1383_v62 = vadd.f32 %v1210_v43, %v2958_v13  ;;  %v2064_v8 = vmul.f32 -1.442695, %v1494_v54 }
 0x1c7   : > { %v1212_v3 = vpop.f32.mrf.mxu1 }
 0x1c8   : > { %v2049_v5 = vmul.f32 -1.442695, %v1383_v62  ;;  %v1495_v33 = vadd.f32 %v1212_v3, %v2960_v15 }
 0x1c9   : > { %v1216_v59 = vpop.f32.mrf.mxu1 }
 0x1ca   : > { %2365 = vpow2.f32 %v2049_v5  ;;  %v1384_v9 = vadd.f32 %v1216_v59, %v2964_v18  ;;  %v2065_v10 = vmul.f32 -1.442695, %v1495_v33 }
 0x1cb   : > { %v1218_v28 = vpop.f32.mrf.mxu1 }
 0x1cc   : > { %v2050_v23 = vmul.f32 -1.442695, %v1384_v9  ;;  %v1496_v38 = vadd.f32 %v1218_v28, %v2966_v19  ;;  %v3055_v9 = vpop.f32.mrf.mxu0 }
 0x1cd   : > { %v1220_v13 = vpop.f32.mrf.mxu1 }
 0x1ce   : > { %2367 = vpow2.f32 %v2050_v23  ;;  %v1385_v43 = vadd.f32 %v1220_v13, %v2970_v22  ;;  %v2066_v59 = vmul.f32 -1.442695, %v1496_v38  ;;  %v3058_v13 = vpop.f32.mrf.mxu0 }
 0x1cf   : > { %2369 = vpow2.f32 %v2064_v8  ;;  %v1222_v62 = vpop.f32.mrf.mxu1 }
 0x1d0   : > { %v2051_v5 = vmul.f32 -1.442695, %v1385_v43  ;;  %v1497_v18 = vadd.f32 %v1222_v62, %v2972_v24 }
 0x1d1   : > { %v1226_v54 = vpop.f32.mrf.mxu1 }
 0x1d2   : > { %2371 = vpow2.f32 %v2051_v5  ;;  %v1386_v15 = vadd.f32 %v1226_v54, %v2976_v27  ;;  %v2067_v28 = vmul.f32 -1.442695, %v1497_v18 }
 0x1d3   : > { %v2364_v3 = vpop.eup %2363  ;;  %v1228_v19 = vpop.f32.mrf.mxu1  ;;  %2373 = vpow2.f32 %v2065_v10 }
 0x1d4   : > { %v1446_v23 = vadd.f32 1.0, %v2364_v3  ;;  %v2052_v22 = vmul.f32 -1.442695, %v1386_v15  ;;  %2375 = vpow2.f32 %v2066_v59  ;;  %v1498_v8 = vadd.f32 %v1228_v19, %v2978_v29  ;;  %v1319_v59 = vpop.f32.mrf.mxu0 }
 0x1d5   : > { %v1230_v33 = vpop.f32.mrf.mxu1 }
 0x1d6   : > { %2377 = vrcp.f32 %v1446_v23  ;;  %v1387_v24 = vadd.f32 %v1230_v33, %v2982_v32  ;;  %v2068_v10 = vmul.f32 -1.442695, %v1498_v8  ;;  %v3066_v32 = vld [vmem:[%s3234_s3] ss:$0 sm:$0xff]  ;;  %v2186_v8 = vpop.f32.mrf.mxu0 }
 0x1d7   : > { %v2366_v38 = vpop.eup %2365  ;;  %2379 = vpow2.f32 %v2052_v22  ;;  %v1232_v27 = vpop.f32.mrf.mxu1 }
 0x1d8   : > { %v1447_v43 = vadd.f32 1.0, %v2366_v38  ;;  %v2053_v62 = vmul.f32 -1.442695, %v1387_v24  ;;  %v1499_v5 = vadd.f32 %v1232_v27, %v2984_v34  ;;  %2381 = vpow2.f32 %v2067_v28 }
 0x1d9   : > { %v1236_v54 = vpop.f32.mrf.mxu1 }
 0x1da   : > { %2383 = vrcp.f32 %v1447_v43  ;;  %v1388_v29 = vadd.f32 %v1236_v54, %v2988_v37  ;;  %v2069_v23 = vmul.f32 -1.442695, %v1499_v5  ;;  %v1613_v43 = vadd.f32 %v3066_v32, %v1319_v59 }
 0x1db   : > { %v2368_v18 = vpop.eup %2367  ;;  %2385 = vpow2.f32 %v2053_v62  ;;  %v1238_v15 = vpop.f32.mrf.mxu1 }
 0x1dc   : > { %v2370_v3 = vpop.eup %2369  ;;  %v1448_v19 = vadd.f32 1.0, %v2368_v18  ;;  %v2054_v22 = vmul.f32 -1.442695, %v1388_v29  ;;  %v1500_v34 = vadd.f32 %v1238_v15, %v2990_v39  ;;  %2387 = vpow2.f32 %v2068_v10  ;;  %v1322_v10 = vpop.f32.mrf.mxu0 }
 0x1dd   : > { %v1240_v28 = vpop.f32.mrf.mxu1  ;;  %v1558_v38 = vadd.f32 1.0, %v2370_v3 }
 0x1de   : > { %2389 = vrcp.f32 %v1448_v19  ;;  %v2070_v33 = vmul.f32 -1.442695, %v1500_v34  ;;  %v1389_v37 = vadd.f32 %v1240_v28, %v2994_v42 }
 0x1df   : > { %v2372_v24 = vpop.eup %2371  ;;  %2391 = vpow2.f32 %v2054_v22  ;;  %v1242_v27 = vpop.f32.mrf.mxu1 }
 0x1e0   : > { %v1449_v62 = vadd.f32 1.0, %v2372_v24  ;;  %2393 = vpow2.f32 %v2069_v23  ;;  %v2055_v54 = vmul.f32 -1.442695, %v1389_v37  ;;  %v1501_v5 = vadd.f32 %v1242_v27, %v2996_v44  ;;  %v2374_v29 = vpop.eup %2373 }
 0x1e1   : > { %2395 = vpow2.f32 %v2070_v33  ;;  %v1246_v39 = vpop.f32.mrf.mxu1  ;;  %v2376_v18 = vpop.eup %2375  ;;  %v1614_v23 = vadd.f32 %v3066_v32, %v1322_v10  ;;  %v1559_v28 = vadd.f32 1.0, %v2374_v29 }
 0x1e2   : > { %2397 = vrcp.f32 %v1449_v62  ;;  %v2071_v15 = vmul.f32 -1.442695, %v1501_v5  ;;  %v1390_v42 = vadd.f32 %v1246_v39, %v3000_v49  ;;  %v1560_v24 = vadd.f32 1.0, %v2376_v18  ;;  %v2189_v29 = vpop.f32.mrf.mxu0 }
 0x1e3   : > { %v2378_v19 = vpop.eup %2377  ;;  %2399 = vpow2.f32 %v2055_v54  ;;  %v1248_v3 = vpop.f32.mrf.mxu1 }
 0x1e4   : > { %v2380_v22 = vpop.eup %2379  ;;  %2401 = vrcp.f32 %v1558_v38  ;;  %v2056_v59 = vmul.f32 -1.442695, %v1390_v42  ;;  %v1629_v34 = vmul.f32 %v2378_v19, %v1613_v43  ;;  %v1615_v38 = vadd.f32 %v3058_v13, %v3066_v32 }
 0x1e5   : > { %v1450_v44 = vadd.f32 1.0, %v2380_v22  ;;  %2403 = vpow2.f32 %v2071_v15  ;;  %v1250_v33 = vpop.f32.mrf.mxu1  ;;  %v2382_v37 = vpop.eup %2381  ;;  %v1616_v13 = vadd.f32 %v2186_v8, %v3066_v32 }
 0x1e6   : > { %2405 = vpow2.f32 %v2056_v59  ;;  %v1645_v27 = vadd.f32 %v2956_v12, %v1629_v34  ;;  %v1391_v49 = vadd.f32 %v1250_v33, %v3006_v2  ;;  %v1561_v39 = vadd.f32 1.0, %v2382_v37 }
 0x1e7   : > { %v2384_v62 = vpop.eup %2383  ;;  %2407 = vrcp.f32 %v1450_v44  ;;  %v1252_v54 = vpop.f32.mrf.mxu1  ;;  %v1502_v12 = vadd.f32 %v1248_v3, %v3002_v55 }
 0x1e8   : > { %v2386_v5 = vpop.eup %2385  ;;  %2409 = vtanh.f32 %v1645_v27  ;;  %v1630_v43 = vmul.f32 %v2384_v62, %v1614_v23  ;;  %v2057_v15 = vmul.f32 -1.442695, %v1391_v49  ;;  %v1335_v23 = vpop.f32.mrf.mxu0 }
 0x1e9   : > { %2411 = vrcp.f32 %v1559_v28  ;;  %v1451_v10 = vadd.f32 1.0, %v2386_v5  ;;  %v1256_v18 = vpop.f32.mrf.mxu1  ;;  %v2388_v42 = vpop.eup %2387  ;;  %v2072_v55 = vmul.f32 -1.442695, %v1502_v12  ;;  %v1617_v5 = vadd.f32 %v3066_v32, %v1335_v23 }
 0x1ea   : > { %2413 = vrcp.f32 %v1560_v24  ;;  %v1646_v19 = vadd.f32 %v2962_v17, %v1630_v43  ;;  %v1562_v44 = vadd.f32 1.0, %v2388_v42  ;;  %v1392_v3 = vadd.f32 %v1256_v18, %v3012_v7 }
 0x1eb   : > { %v2390_v2 = vpop.eup %2389  ;;  %2415 = vrcp.f32 %v1451_v10  ;;  %v1258_v22 = vpop.f32.mrf.mxu1  ;;  %v1503_v18 = vadd.f32 %v1252_v54, %v3008_v4 }
 0x1ec   : > { %v2392_v59 = vpop.eup %2391  ;;  %v1631_v34 = vmul.f32 %v2390_v2, %v1615_v38  ;;  %2417 = vpow2.f32 %v2057_v15  ;;  %v2190_v38 = vpop.f32.mrf.mxu0  ;;  %v2058_v2 = vmul.f32 -1.442695, %v1392_v3 }
 0x1ed   : > { %v2394_v28 = vpop.eup %2393  ;;  %2419 = vrcp.f32 %v1561_v39  ;;  %v1452_v33 = vadd.f32 1.0, %v2392_v59  ;;  %v1260_v37 = vpop.f32.mrf.mxu1 }
 0x1ee   : > { %v2396_v27 = vpop.eup %2395  ;;  %v1647_v24 = vadd.f32 %v2968_v21, %v1631_v34  ;;  %2421 = vtanh.f32 %v1646_v19  ;;  %v1563_v39 = vadd.f32 1.0, %v2394_v28  ;;  %v1393_v21 = vadd.f32 %v1260_v37, %v3018_v20  ;;  %v1338_v28 = vpop.f32.mrf.mxu0 }
 0x1ef   : > { %v2398_v17 = vpop.eup %2397  ;;  %2423 = vrcp.f32 %v1452_v33  ;;  %v1262_v62 = vpop.f32.mrf.mxu1  ;;  %v1564_v12 = vadd.f32 1.0, %v2396_v27  ;;  %v1619_v20 = vadd.f32 %v2189_v29, %v3066_v32  ;;  %v1618_v29 = vadd.f32 %v3066_v32, %v1338_v28 }
 0x1f0   : > { %v2400_v49 = vpop.eup %2399  ;;  %2425 = vtanh.f32 %v1647_v24  ;;  %v1632_v8 = vmul.f32 %v2398_v17, %v1616_v13  ;;  %v2073_v24 = vmul.f32 -1.442695, %v1503_v18 }
 0x1f1   : > { %v2402_v43 = vpop.eup %2401  ;;  %2427 = vrcp.f32 %v1562_v44  ;;  %v1453_v10 = vadd.f32 1.0, %v2400_v49  ;;  %v1266_v15 = vpop.f32.mrf.mxu1  ;;  %v1504_v49 = vadd.f32 %v1258_v22, %v3014_v11 }
 0x1f2   : > { %v2404_v42 = vpop.eup %2403  ;;  %2429 = vpow2.f32 %v2072_v55  ;;  %v1648_v7 = vadd.f32 %v2974_v26, %v1632_v8  ;;  %v1677_v13 = vsub.f32 1.0, %v2402_v43  ;;  %v1709_v33 = vmul.f32 %v2402_v43, %v2888_v47  ;;  %v3097_v47 = vpop.f32.mrf.mxu0 }
 0x1f3   : > { %v2406_v19 = vpop.eup %2405  ;;  %2431 = vrcp.f32 %v1453_v10  ;;  %v1268_v59 = vpop.f32.mrf.mxu1  ;;  %v2059_v26 = vmul.f32 -1.442695, %v1393_v21  ;;  %v1394_v4 = vadd.f32 %v1266_v15, %v3026_v40  ;;  %v1565_v3 = vadd.f32 1.0, %v2404_v42 }
 0x1f4   : > { %v2408_v34 = vpop.eup %2407  ;;  %v1454_v23 = vadd.f32 1.0, %v2406_v19  ;;  %2433 = vtanh.f32 %v1648_v7  ;;  %v1505_v15 = vadd.f32 %v1262_v62, %v3022_v30  ;;  %v2074_v19 = vmul.f32 -1.442695, %v1504_v49 }
 0x1f5   : > { %v2410_v44 = vpop.eup %2409  ;;  %2435 = vrcp.f32 %v1563_v39  ;;  %v1270_v54 = vpop.f32.mrf.mxu1  ;;  %v1633_v55 = vmul.f32 %v2408_v34, %v1617_v5  ;;  %v1620_v39 = vadd.f32 %v2190_v38, %v3066_v32  ;;  %v2060_v42 = vmul.f32 -1.442695, %v1394_v4 }
 0x1f6   : > { %v2412_v37 = vpop.eup %2411  ;;  %2437 = vrcp.f32 %v1564_v12  ;;  %v1693_v27 = vmul.f32 %v2410_v44, %v1677_v13  ;;  %v1395_v10 = vadd.f32 %v1270_v54, %v3034_v14  ;;  %v1351_v34 = vpop.f32.mrf.mxu0  ;;  %v1506_v13 = vadd.f32 %v1268_v59, %v3030_v60 }
 0x1f7   : > { %v2414_v17 = vpop.eup %2413  ;;  %2439 = vpow2.f32 %v2058_v2  ;;  %v1272_v8 = vpop.f32.mrf.mxu1  ;;  %v1678_v5 = vsub.f32 1.0, %v2412_v37  ;;  %v1710_v12 = vmul.f32 %v2412_v37, %v2891_v48  ;;  %v1649_v38 = vadd.f32 %v2980_v31, %v1633_v55 }
 0x1f8   : > { %v2416_v43 = vpop.eup %2415  ;;  %2441 = vrcp.f32 %v1454_v23  ;;  %v1725_v40 = vadd.f32 %v1709_v33, %v1693_v27  ;;  %v1679_v14 = vsub.f32 1.0, %v2414_v17  ;;  %v2061_v48 = vmul.f32 -1.442695, %v1395_v10 }
 0x1f9   : > { %v2418_v21 = vpop.eup %2417  ;;  %2443 = vpow2.f32 %v2059_v26  ;;  %v1276_v11 = vpop.f32.mrf.mxu1  ;;  %v1634_v2 = vmul.f32 %v2416_v43, %v1618_v29  ;;  %v1711_v28 = vmul.f32 %v2414_v17, %v2899_v50  ;;  %v2075_v44 = vmul.f32 -1.442695, %v1505_v15 }
 0x1fa   : > { %v2420_v22 = vpop.eup %2419  ;;  %1741 = vst [vmem:[%s3104_s15] sm:$0xff] %v1725_v40  ;;  %v1455_v7 = vadd.f32 1.0, %v2418_v21  ;;  %2445 = vpow2.f32 %v2073_v24  ;;  %v1396_v37 = vadd.f32 %v1276_v11, %v3042_v45  ;;  %v3115_v50 = vpop.f32.mrf.mxu0  ;;  %v2076_v17 = vmul.f32 -1.442695, %v1506_v13 }
 0x1fb   : > { %v2422_v18 = vpop.eup %2421  ;;  %2447 = vrcp.f32 %v1565_v3  ;;  %v1278_v31 = vpop.f32.mrf.mxu1  ;;  %v1650_v59 = vadd.f32 %v2986_v36, %v1634_v2  ;;  %v1680_v24 = vsub.f32 1.0, %v2420_v22  ;;  %v1712_v49 = vmul.f32 %v2420_v22, %v2902_v51 }
 0x1fc   : > { %v2424_v30 = vpop.eup %2423  ;;  %2449 = vrcp.f32 %v1455_v7  ;;  %v1694_v62 = vmul.f32 %v2422_v18, %v1678_v5  ;;  %v1507_v36 = vadd.f32 %v1272_v8, %v3039_v1  ;;  %v2062_v40 = vmul.f32 -1.442695, %v1396_v37  ;;  %v1354_v5 = vpop.f32.mrf.mxu0 }
 0x1fd   : > { %v2426_v23 = vpop.eup %2425  ;;  %v1635_v33 = vmul.f32 %v2424_v30, %v1619_v20  ;;  %2451 = vpow2.f32 %v2060_v42  ;;  %v1280_v29 = vpop.f32.mrf.mxu1  ;;  %v1621_v22 = vadd.f32 %v3066_v32, %v1351_v34  ;;  %v1622_v1 = vadd.f32 %v3066_v32, %v1354_v5 }
 0x1fe   : > { %v3110_v26 = vpop.eup %2427  ;;  %v1695_v4 = vmul.f32 %v2426_v23, %v1679_v14  ;;  %v1726_v54 = vadd.f32 %v1710_v12, %v1694_v62  ;;  %2453 = vtanh.f32 %v1649_v38  ;;  %v1397_v51 = vadd.f32 %v1280_v29, %v3051_v63 }
 0x1ff   : > { %v2430_v27 = vpop.eup %2429  ;;  %2455 = vpow2.f32 %v2074_v19  ;;  %v1651_v60 = vadd.f32 %v2992_v41, %v1635_v33  ;;  %v2077_v7 = vmul.f32 -1.442695, %v1507_v36  ;;  %v1508_v18 = vadd.f32 %v1278_v31, %v3046_v0  ;;  %v1282_v13 = vpop.f32.mrf.mxu1 }
 0x200   : > { %v2432_v20 = vpop.eup %2431  ;;  %v1727_v55 = vadd.f32 %v1711_v28, %v1695_v4  ;;  %1742 = vst [vmem:[%s3104_s15 + $0x8] sm:$0xff] %v1726_v54  ;;  %2457 = vpow2.f32 %v2061_v48  ;;  %v2063_v19 = vmul.f32 -1.442695, %v1397_v51  ;;  %v1681_v34 = vsub.f32 1.0, %v3110_v26  ;;  %v3130_v33 = vpop.f32.mrf.mxu0 }
 0x201   : > { %v2434_v3 = vpop.eup %2433  ;;  %2459 = vtanh.f32 %v1651_v60  ;;  %v1636_v45 = vmul.f32 %v2432_v20, %v1620_v39  ;;  %v1713_v0 = vmul.f32 %v3110_v26, %v2905_v52  ;;  %v1623_v54 = vadd.f32 %v3097_v47, %v3066_v32 }
 0x202   : > { %v3119_v43 = vpop.eup %2435  ;;  %1743 = vst [vmem:[%s3104_s15 + $0x10] sm:$0xff] %v1727_v55  ;;  %v1696_v41 = vmul.f32 %v2434_v3, %v1680_v24  ;;  %2461 = vpow2.f32 %v2075_v44  ;;  %v2078_v44 = vmul.f32 -1.442695, %v1508_v18  ;;  %v1509_v60 = vadd.f32 %v1282_v13, %v3055_v9 }
 0x203   : > { %v2438_v10 = vpop.eup %2437  ;;  %v1652_v21 = vadd.f32 %v2998_v46, %v1636_v45  ;;  %2463 = vtanh.f32 %v1650_v59  ;;  %v1566_v46 = vadd.f32 1.0, %v2430_v27  ;;  %v1682_v26 = vsub.f32 1.0, %v3119_v43 }
 0x204   : > { %v2440_v15 = vpop.eup %2439  ;;  %v1728_v42 = vadd.f32 %v1712_v49, %v1696_v41  ;;  %2465 = vpow2.f32 %v2076_v17  ;;  %v1683_v27 = vsub.f32 1.0, %v2438_v10  ;;  %v1715_v3 = vmul.f32 %v2438_v10, %v2916_v56  ;;  %v1367_v49 = vpop.f32.mrf.mxu0 }
 0x205   : > { %v2442_v39 = vpop.eup %2441  ;;  %v1456_v11 = vadd.f32 1.0, %v2440_v15  ;;  %2467 = vtanh.f32 %v1652_v21  ;;  %v1714_v9 = vmul.f32 %v3119_v43, %v2908_v53  ;;  %v1624_v56 = vadd.f32 %v3115_v50, %v3066_v32 }
 0x206   : > { %v2444_v12 = vpop.eup %2443  ;;  %1744 = vst [vmem:[%s3104_s15 + $0x18] sm:$0xff] %v1728_v42  ;;  %2469 = vpow2.f32 %v2062_v40  ;;  %v1637_v2 = vmul.f32 %v2442_v39, %v1621_v22  ;;  %v2079_v40 = vmul.f32 -1.442695, %v1509_v60  ;;  %v3148_v42 = vpop.f32.mrf.mxu0 }
 0x207   : > { %v2446_v8 = vpop.eup %2445  ;;  %2471 = vrcp.f32 %v1456_v11  ;;  %v1457_v38 = vadd.f32 1.0, %v2444_v12 }
 0x208   : > { %v2448_v14 = vpop.eup %2447  ;;  %v1567_v62 = vadd.f32 1.0, %v2446_v8  ;;  %v1653_v59 = vadd.f32 %v3004_v61, %v1637_v2  ;;  %v1625_v8 = vadd.f32 %v3066_v32, %v1367_v49 }
 0x209   : > { %v2450_v63 = vpop.eup %2449  ;;  %2473 = vrcp.f32 %v1457_v38  ;;  %v1684_v61 = vsub.f32 1.0, %v2448_v14  ;;  %v1716_v5 = vmul.f32 %v2448_v14, %v2919_v57 }
 0x20a   : > { %v2452_v30 = vpop.eup %2451  ;;  %2475 = vpow2.f32 %v2077_v7  ;;  %v1638_v48 = vmul.f32 %v2450_v63, %v1622_v1 }
 0x20b   : > { %v2454_v23 = vpop.eup %2453  ;;  %2477 = vrcp.f32 %v1566_v46  ;;  %v1458_v28 = vadd.f32 1.0, %v2452_v30  ;;  %v1370_v46 = vpop.f32.mrf.mxu0 }
 0x20c   : > { %v2456_v4 = vpop.eup %2455  ;;  %v1697_v31 = vmul.f32 %v2454_v23, %v1681_v34  ;;  %2479 = vpow2.f32 %v2063_v19  ;;  %v1654_v17 = vadd.f32 %v3010_v6, %v1638_v48  ;;  %v1626_v30 = vadd.f32 %v3066_v32, %v1370_v46  ;;  %v2523_v46 = vld [vmem:[%s2881_s10 + $0x68] sm:$0xff] }
 0x20d   : > { %v2458_v37 = vpop.eup %2457  ;;  %2481 = vrcp.f32 %v1458_v28  ;;  %v1568_v29 = vadd.f32 1.0, %v2456_v4 }
 0x20e   : > { %v2460_v20 = vpop.eup %2459  ;;  %2483 = vrcp.f32 %v1567_v62  ;;  %v1729_v24 = vadd.f32 %v1713_v0, %v1697_v31  ;;  %v1459_v55 = vadd.f32 1.0, %v2458_v37 }
 0x20f   : > { %v2462_v52 = vpop.eup %2461  ;;  %v1699_v47 = vmul.f32 %v2460_v20, %v1683_v27  ;;  %2485 = vpow2.f32 %v2078_v44 }
 0x210   : > { %v2464_v45 = vpop.eup %2463  ;;  %1745 = vst [vmem:[%s3104_s15 + $0x20] sm:$0xff] %v1729_v24  ;;  %2487 = vrcp.f32 %v1459_v55  ;;  %v1569_v53 = vadd.f32 1.0, %v2462_v52  ;;  %v1627_v52 = vadd.f32 %v3130_v33, %v3066_v32  ;;  %v1628_v33 = vadd.f32 %v3148_v42, %v3066_v32 }
 0x211   : > { %v2466_v41 = vpop.eup %2465  ;;  %v1731_v36 = vadd.f32 %v1715_v3, %v1699_v47  ;;  %v1698_v6 = vmul.f32 %v2464_v45, %v1682_v26  ;;  %2489 = vtanh.f32 %v1653_v59  ;;  %v3260_v59 = vld [vmem:[#allocation15_spill] sm:$0xff] }
 0x212   : > { %v2468_v21 = vpop.eup %2467  ;;  %2491 = vtanh.f32 %v1654_v17  ;;  %v1570_v50 = vadd.f32 1.0, %v2466_v41  ;;  %v3262_v41 = vld [vmem:[#allocation12_spill] sm:$0xff] }
 0x213   : > { %v2470_v10 = vpop.eup %2469  ;;  %1747 = vst [vmem:[%s3104_s15 + $0x30] sm:$0xff] %v1731_v36  ;;  %v1700_v43 = vmul.f32 %v2468_v21, %v1684_v61  ;;  %v1730_v15 = vadd.f32 %v1714_v9, %v1698_v6  ;;  %2493 = vrcp.f32 %v1568_v29  ;;  %v3261_v9 = vld [vmem:[#allocation16_spill] sm:$0xff] }
 0x214   : > { %v2472_v51 = vpop.eup %2471  ;;  %v1460_v39 = vadd.f32 1.0, %v2470_v10  ;;  %2495 = vpow2.f32 %v2079_v40  ;;  %v3263_v10 = vld [vmem:[#allocation13_spill] sm:$0xff] }
 0x215   : > { %v1732_v11 = vadd.f32 %v1716_v5, %v1700_v43  ;;  %1746 = vst [vmem:[%s3104_s15 + $0x28] sm:$0xff] %v1730_v15  ;;  %v1639_v22 = vmul.f32 %v2472_v51, %v1623_v54  ;;  %v3259_v54 = vld [vmem:[#allocation11_spill] sm:$0xff] }
 0x216   : > { %v2474_v12 = vpop.eup %2473  ;;  %2497 = vrcp.f32 %v1460_v39 }
 0x217   : > { %v2476_v7 = vpop.eup %2475  ;;  %2499 = vrcp.f32 %v1569_v53  ;;  %1748 = vst [vmem:[%s3104_s15 + $0x38] sm:$0xff] %v1732_v11  ;;  %v1655_v57 = vadd.f32 %v3016_v16, %v1639_v22  ;;  %v1640_v1 = vmul.f32 %v2474_v12, %v1624_v56  ;;  %v3264_v12 = vld [vmem:[#allocation17_spill] sm:$0xff] }
 0x218   : > { %v2478_v38 = vpop.eup %2477  ;;  %v1571_v63 = vadd.f32 1.0, %v2476_v7  ;;  %v3265_v7 = vld [vmem:[#allocation14_spill] sm:$0xff] }
 0x219   : > { %v2480_v18 = vpop.eup %2479  ;;  %2501 = vtanh.f32 %v1655_v57  ;;  %v1656_v14 = vadd.f32 %v3020_v25, %v1640_v1  ;;  %v1685_v48 = vsub.f32 1.0, %v2478_v38  ;;  %v1717_v0 = vmul.f32 %v2478_v38, %v2922_v58 }
 0x21a   : > { %v2482_v19 = vpop.eup %2481  ;;  %2503 = vrcp.f32 %v1570_v50  ;;  %v1461_v2 = vadd.f32 1.0, %v2480_v18 }
 0x21b   : > { %v2484_v34 = vpop.eup %2483  ;;  %2505 = vtanh.f32 %v1656_v14  ;;  %v1641_v62 = vmul.f32 %v2482_v19, %v1625_v8 }
 0x21c   : > { %v2486_v13 = vpop.eup %2485  ;;  %2507 = vrcp.f32 %v1461_v2  ;;  %v1686_v44 = vsub.f32 1.0, %v2484_v34  ;;  %v1718_v37 = vmul.f32 %v2484_v34, %v3259_v54 }
 0x21d   : > { %v2488_v16 = vpop.eup %2487  ;;  %v1657_v23 = vadd.f32 %v3024_v35, %v1641_v62  ;;  %2509 = vrcp.f32 %v1571_v63  ;;  %v1572_v27 = vadd.f32 1.0, %v2486_v13 }
 0x21e   : > { %v2490_v28 = vpop.eup %2489  ;;  %v1642_v4 = vmul.f32 %v2488_v16, %v1626_v30  ;;  %v2524_v30 = vld [vmem:[%s2881_s10 + $0x70] sm:$0xff] }
 0x21f   : > { %v2492_v25 = vpop.eup %2491  ;;  %v1701_v31 = vmul.f32 %v2490_v28, %v1685_v48  ;;  %2511 = vtanh.f32 %v1657_v23  ;;  %v2525_v28 = vld [vmem:[%s2881_s10 + $0x78] sm:$0xff] }
 0x220   : > { %v1702_v60 = vmul.f32 %v2492_v25, %v1686_v44  ;;  %v1658_v20 = vadd.f32 %v3260_v59, %v1642_v4  ;;  %v2494_v24 = vpop.eup %2493 }
 0x221   : > { %v1733_v55 = vadd.f32 %v1717_v0, %v1701_v31  ;;  %v2496_v35 = vpop.eup %2495  ;;  %v1687_v47 = vsub.f32 1.0, %v2494_v24  ;;  %v1719_v36 = vmul.f32 %v2494_v24, %v3262_v41 }
 0x222   : > { %v1734_v17 = vadd.f32 %v1718_v37, %v1702_v60  ;;  %2513 = vtanh.f32 %v1658_v20  ;;  %v1573_v45 = vadd.f32 1.0, %v2496_v35 }
 0x223   : > { %v2498_v26 = vpop.eup %2497  ;;  %1749 = vst [vmem:[%s3104_s15 + $0x40] sm:$0xff] %v1733_v55  ;;  %2515 = vrcp.f32 %v1572_v27 }
 0x224   : > { %v2500_v58 = vpop.eup %2499  ;;  %1750 = vst [vmem:[%s3104_s15 + $0x48] sm:$0xff] %v1734_v17  ;;  %v1643_v3 = vmul.f32 %v2498_v26, %v1627_v52 }
 0x225   : > { %v1688_v6 = vsub.f32 1.0, %v2500_v58  ;;  %v1720_v5 = vmul.f32 %v2500_v58, %v3263_v10 }
 0x226   : > { %v2502_v49 = vpop.eup %2501  ;;  %v1659_v61 = vadd.f32 %v3261_v9, %v1643_v3 }
 0x227   : > { %v2504_v29 = vpop.eup %2503  ;;  %v1703_v40 = vmul.f32 %v2502_v49, %v1687_v47 }
 0x228   : > { %v2506_v21 = vpop.eup %2505  ;;  %2517 = vtanh.f32 %v1659_v61  ;;  %v1689_v39 = vsub.f32 1.0, %v2504_v29  ;;  %v1721_v57 = vmul.f32 %v2504_v29, %v3265_v7 }
 0x229   : > { %v2508_v56 = vpop.eup %2507  ;;  %v1735_v53 = vadd.f32 %v1719_v36, %v1703_v40  ;;  %v1704_v43 = vmul.f32 %v2506_v21, %v1688_v6  ;;  %2519 = vrcp.f32 %v1573_v45 }
 0x22a   : > { %v1644_v15 = vmul.f32 %v2508_v56, %v1628_v33  ;;  %v2510_v51 = vpop.eup %2509 }
 0x22b   : > { %1751 = vst [vmem:[%s3104_s15 + $0x50] sm:$0xff] %v1735_v53  ;;  %v1736_v11 = vadd.f32 %v1720_v5, %v1704_v43  ;;  %v1690_v42 = vsub.f32 1.0, %v2510_v51  ;;  %v1722_v38 = vmul.f32 %v2523_v46, %v2510_v51 }
 0x22c   : > { %v2512_v22 = vpop.eup %2511  ;;  %v1660_v50 = vadd.f32 %v3264_v12, %v1644_v15 }
 0x22d   : > { %1752 = vst [vmem:[%s3104_s15 + $0x58] sm:$0xff] %v1736_v11  ;;  %v1705_v32 = vmul.f32 %v2512_v22, %v1689_v39 }
 0x22e   : > { %2521 = vtanh.f32 %v1660_v50 }
 0x22f   : > { %v2514_v1 = vpop.eup %2513  ;;  %v1737_v8 = vadd.f32 %v1721_v57, %v1705_v32 }
 0x230   : > { %v1706_v18 = vmul.f32 %v2514_v1, %v1690_v42  ;;  %v2516_v14 = vpop.eup %2515 }
 0x231   : > { %1753 = vst [vmem:[%s3104_s15 + $0x60] sm:$0xff] %v1737_v8  ;;  %v1691_v63 = vsub.f32 1.0, %v2516_v14  ;;  %v1723_v34 = vmul.f32 %v2524_v30, %v2516_v14 }
 0x232   : > { %v1738_v19 = vadd.f32 %v1722_v38, %v1706_v18 }
 0x234   : > { %1754 = vst [vmem:[%s3104_s15 + $0x68] sm:$0xff] %v1738_v19 }
 0x235   : > { %v2518_v2 = vpop.eup %2517 }
 0x236   : > { %v1707_v62 = vmul.f32 %v2518_v2, %v1691_v63  ;;  %v2520_v13 = vpop.eup %2519 }
 0x237   : > { %v1692_v48 = vsub.f32 1.0, %v2520_v13  ;;  %v1724_v44 = vmul.f32 %v2525_v28, %v2520_v13 }
 0x238   : > { %v1739_v16 = vadd.f32 %v1723_v34, %v1707_v62 }
 0x23a   : > { %1755 = vst [vmem:[%s3104_s15 + $0x70] sm:$0xff] %v1739_v16 }
 0x23b   : > { %v2522_v23 = vpop.eup %2521 }
 0x23c   : > { %v1708_v4 = vmul.f32 %v2522_v23, %v1692_v48 }
 0x23e   : > { %v1740_v25 = vadd.f32 %v1724_v44, %v1708_v4 }
 0x240   : > { %1756 = vst [vmem:[%s3104_s15 + $0x78] sm:$0xff] %v1740_v25 }
 0x241   : > { %2591 = shalt.err (!%p2588_p3)
}
 0x242   : > { %s2592_s9 = scalar_lea.hbm %s3184_s26, 2048  ;;  %s2596_s12 = scalar_lea.hbm %s3236_s5, 4096 }
 0x243   : > { %p2593_p2 = scmp.ne.s32.totalorder %s3184_s26, %s2592_s9  ;;  %p2597_p7 = scmp.lt.s32.totalorder %s3184_s26, %s3236_s5 }
 0x244   : > { %p2598_p6 = scmp.lt.s32.totalorder %s2596_s12, %s2592_s9 }
 0x245   : > { %p2594_p4 = pnand %p2593_p2, %p2725_p5 }
 0x246   : > { %p2599_p9 = por %p2598_p6, %p2597_p7 }
 0x247   : > { %p2595_p13 = pneg %p2594_p4 }
 0x249   : > { %p2600_p10 = pnand %p2599_p9, %p2595_p13 }
 0x24b   : > { %2603 = shalt.err (!%p2600_p10)
}
 0x24c   : > { %s2655_s15 = smov 128   ;;  %s2656_s16 = smov 8  }
 0x24d   : > { %2207 = dma.vmem_to_hbm [thread:$0]  (%p2725_p5), %s3186_s17, 2048, %s3184_s26, %s3191_s30, %s2655_s15, %s2655_s15, %s2656_s16  }
 0x24e PF: > { %p2224_p12 = scmp.ge.s32.totalorder %s2646_s21, 2  ;;  %s1786_s23 = sand.u32 1, %s2634_s18  }
 0x24f   : > { %p3266_p8 = scmp.ne.s32.totalorder %s3243_s29, 0  ;;  %s1787_s25 = scalar_lea.sflag [#allocation4], %s1786_s23 }
 0x251   : > { %p2217_p11 = pnand %p2224_p12, %p3266_p8 }
 0x253   : > { %p2218_p0 = pneg %p2217_p11 }
 0x255   : > { %2629 = dma.done.wait (%p2218_p0), %s1787_s25, 2048  }
 0x256   : > { %2631 = vsyncadd (%p2218_p0), %s1787_s25, 4294965248  ;;  %p17_p1 = scmp.ge.s32.totalorder %s2712_s24, 4   ;;  %s3267_s18 = smov %s2638_s19 }
 0x257   : > { %s3268_s19 = smov %s2642_s20  ;;  %s3269_s20 = smov %s2723_s27 }
 0x258   : > { %s3270_s21 = smov %s2712_s24  ;;  %19 = sbr.rel (!%p17_p1) target bundleno = 5 (0x5), region = 87 }
 0x25d   :  { %1792 = vsyncpa [#allocation3], 1 }
 0x25e   :  { %1794 = vsyncpa [#allocation3 + $0x1], 1 }
 0x25f   :  { %1795 = vsyncpa [#allocation6], 1 }
 0x260   :  { %1796 = vsyncpa [#allocation4], 1 }
 0x261   :  { %1798 = vsyncpa [#allocation4 + $0x1], 1 }

</bundles_post_ra>
